<compile_context>
chip_gen: v7x
topology: tpu7x:2x2x1
jax: 0.10.0
libtpu: 0.0.40
codegen_flags: <defaults>
</compile_context>

<pallas_src>
import jax
import jax.numpy as jnp
from jax import lax
from jax.experimental import pallas as pl
from jax.experimental.pallas import tpu as pltpu

# Geometry of the module (16x16 input).
H = W = 16
S = H * W          # flattened spatial size -> the lane axis (256 lanes)
C_IN = 6
C_MID = 18
CIN_PAD = 8        # input channels padded to one sublane tile
C_PAD = 24         # hidden channels padded to a multiple of 8 (aligned concats)


# ------------------------------ kernel helpers ------------------------------

def _shift_lanes(x, d):
    """out[:, s] = x[:, (s + d) % S] — a lane rotation (XLU path).

    Wrapped values only ever land in invalid ("garbage") output positions,
    which are never consumed downstream.
    """
    if d == 0:
        return x
    return jnp.concatenate([x[:, d:], x[:, :d]], axis=1)


def _conv3x3(x, w_ref, b_ref, dilation):
    """Valid 3x3 conv as ONE im2col GEMM on the MXU.

    x:     (cin_pad, S) f32 activation at full 16x16 resolution.
    w_ref: (C_PAD, 9*cin_pad) bf16, columns ordered (kh*3+kw)*cin_pad + ci.
    b_ref: (C_PAD, 1) f32 bias column (padded rows are zero).
    """
    taps = []
    for kh in range(3):
        for kw in range(3):
            taps.append(_shift_lanes(x, dilation * (kh * W + kw)))
    patches = jnp.concatenate(taps, axis=0).astype(jnp.bfloat16)   # (9*cin_pad, S)
    y = jnp.dot(w_ref[...], patches, preferred_element_type=jnp.float32)
    return y + b_ref[...]                                          # (C_PAD, S) f32


def _maxpool2x2(x):
    """2x2/2 max pool kept at full resolution: the true pooled value for
    output (p, q) sits at position (2p, 2q); later convs read it with
    dilation 2.  3 rotations + 3 maxima, one dense result."""
    return jnp.maximum(jnp.maximum(x, _shift_lanes(x, 1)),
                       jnp.maximum(_shift_lanes(x, W), _shift_lanes(x, W + 1)))


# -------------------------------- fused kernel ------------------------------

def actor_fused_kernel(x_ref, st_ref, ag_ref,
                       c1w_ref, c1b_ref, c2w_ref, c2b_ref,
                       c3w_ref, c3b_ref, c4w_ref, c4b_ref,
                       w1f_ref, w1s_ref, b1_ref, w2_ref, b2_ref,
                       wa1_ref, ba1_ref, wa2_ref, ba2_ref,
                       o_ref):
    # ---- feature_extraction2 (one sample per grid step) ----
    x = x_ref[0]                                    # (CIN_PAD, S) f32
    y = _conv3x3(x, c1w_ref, c1b_ref, 1)            # Conv2d(6, 18, 3)
    y = _conv3x3(y, c2w_ref, c2b_ref, 1)            # Conv2d(18, 18, 3)
    y = _maxpool2x2(y)                              # MaxPool2d(2, 2)
    y = _conv3x3(y, c3w_ref, c3b_ref, 2)            # Conv2d(18, 18, 3) on pooled grid
    y = _conv3x3(y, c4w_ref, c4b_ref, 2)            # Conv2d(18, 18, 3)

    # AvgPool2d(2, 2) + Flatten: the valid 2x2 tail sits at lanes {0, 2, 32, 34}.
    feat = 0.25 * (y[:, 0:1] + y[:, 2:3]
                   + y[:, 2 * W:2 * W + 1] + y[:, 2 * W + 2:2 * W + 3])  # (C_PAD, 1)

    # ---- shared tanh MLP (fc1 split over [features | scores, times]) ----
    st = st_ref[0].astype(jnp.bfloat16)             # (2, 1)
    h = jnp.tanh(
        jnp.dot(w1f_ref[...], feat.astype(jnp.bfloat16),
                preferred_element_type=jnp.float32)
        + jnp.dot(w1s_ref[...], st, preferred_element_type=jnp.float32)
        + b1_ref[...])                                                   # (64, 1)
    h = jnp.tanh(jnp.dot(w2_ref[...], h.astype(jnp.bfloat16),
                         preferred_element_type=jnp.float32) + b2_ref[...])

    # ---- agent heads, per-sample head select, softmax over actions ----
    hb = h.astype(jnp.bfloat16)
    l1 = jnp.dot(wa1_ref[...], hb, preferred_element_type=jnp.float32) + ba1_ref[...]
    l2 = jnp.dot(wa2_ref[...], hb, preferred_element_type=jnp.float32) + ba2_ref[...]
    logits = jnp.where(ag_ref[0] == 0, l1, l2)      # (num_outputs, 1)
    m = jnp.max(logits, axis=0, keepdims=True)
    e = jnp.exp(logits - m)
    denom = jnp.sum(e, axis=0, keepdims=True)
    o_ref[0] = e * pl.reciprocal(denom, approx=True)


# --------------------------------- wrapper ----------------------------------

def _prep_conv(w_hwio, b_row, cin_pad):
    """(3,3,cin,cout) HWIO conv weight -> (C_PAD, 9*cin_pad) bf16 GEMM weight
    (column order (kh*3+kw)*cin_pad + ci); bias -> (C_PAD, 1) f32 column."""
    kh, kw, cin, cout = w_hwio.shape
    wp = jnp.zeros((kh, kw, cin_pad, C_PAD), jnp.float32)
    wp = wp.at[:, :, :cin, :cout].set(w_hwio.astype(jnp.float32))
    wp = wp.reshape(kh * kw * cin_pad, C_PAD).T
    bp = jnp.zeros((C_PAD, 1), jnp.float32).at[:cout, 0].set(
        b_row.reshape(-1).astype(jnp.float32))
    return wp.astype(jnp.bfloat16), bp


def actor_network_forward(params, states, scores, times, agents):
    """states: NCHW (N, 6, 16, 16); scores/times: (N, 1); agents: (N,) 0/1.

    Returns the per-sample action probabilities (N, num_outputs).
    """
    n, c_in, h_in, w_in = states.shape
    assert (c_in, h_in, w_in) == (C_IN, H, W), "kernel implements the 16x16 geometry"
    na = params["agent1_w"].shape[1]
    feat_dim = params["fc1_w"].shape[0] - 2
    assert feat_dim == C_MID

    # ---- input prep (layout only) ----
    x = states.astype(jnp.float32)
    x = jnp.pad(x, ((0, 0), (0, CIN_PAD - C_IN), (0, 0), (0, 0)))
    x = x.reshape(n, CIN_PAD, S)                                   # channel-major, flat spatial
    st = jnp.concatenate([scores, times], axis=1).astype(jnp.float32).reshape(n, 2, 1)
    ag = jnp.asarray(agents, jnp.int32).reshape(n, 1, 1)

    # ---- weight prep (transposed "column" layout, bf16 MXU operands) ----
    c1w, c1b = _prep_conv(params["conv1_w"], params["conv1_b"], CIN_PAD)
    c2w, c2b = _prep_conv(params["conv2_w"], params["conv2_b"], C_PAD)
    c3w, c3b = _prep_conv(params["conv3_w"], params["conv3_b"], C_PAD)
    c4w, c4b = _prep_conv(params["conv4_w"], params["conv4_b"], C_PAD)

    fc1 = params["fc1_w"].astype(jnp.float32)                      # (feat_dim + 2, 64)
    w1f = jnp.zeros((64, C_PAD), jnp.float32).at[:, :feat_dim].set(
        fc1[:feat_dim].T).astype(jnp.bfloat16)                     # (64, C_PAD)
    w1s = fc1[feat_dim:].T.astype(jnp.bfloat16)                    # (64, 2)
    b1 = params["fc1_b"].reshape(-1, 1).astype(jnp.float32)        # (64, 1)
    w2 = params["fc2_w"].T.astype(jnp.bfloat16)                    # (64, 64)
    b2 = params["fc2_b"].reshape(-1, 1).astype(jnp.float32)
    wa1 = params["agent1_w"].T.astype(jnp.bfloat16)                # (na, 64)
    ba1 = params["agent1_b"].reshape(-1, 1).astype(jnp.float32)
    wa2 = params["agent2_w"].T.astype(jnp.bfloat16)
    ba2 = params["agent2_b"].reshape(-1, 1).astype(jnp.float32)

    weights = (c1w, c1b, c2w, c2b, c3w, c3b, c4w, c4b,
               w1f, w1s, b1, w2, b2, wa1, ba1, wa2, ba2)

    out = pl.pallas_call(
        actor_fused_kernel,
        out_shape=jax.ShapeDtypeStruct((n, na, 1), jnp.float32),
        grid=(n,),
        in_specs=[
            pl.BlockSpec((1, CIN_PAD, S), lambda i: (i, 0, 0)),    # states block
            pl.BlockSpec((1, 2, 1), lambda i: (i, 0, 0)),          # [score, time] column
            pl.BlockSpec((1, 1, 1), lambda i: (i, 0, 0)),          # agent id
        ] + [pl.BlockSpec(wgt.shape, lambda i: (0, 0)) for wgt in weights],
        out_specs=pl.BlockSpec((1, na, 1), lambda i: (i, 0, 0)),
        compiler_params=pltpu.CompilerParams(
            dimension_semantics=("parallel",)),
    )(x, st, ag, *weights)
    return out[:, :, 0]


# ------------------------------ model parameters ----------------------------

def init_params(key, num_inputs, num_outputs):
    ks = jax.random.split(key, 16)

    def conv_w(k, cin, cout):
        return 0.1 * jax.random.normal(k, (3, 3, cin, cout), jnp.float32)

    def lin_w(k, din, dout):
        return 0.1 * jax.random.normal(k, (din, dout), jnp.float32)

    def bias(k, d):
        return 0.01 * jax.random.normal(k, (1, d), jnp.float32)

    return dict(
        conv1_w=conv_w(ks[0], 6, 18),  conv1_b=bias(ks[1], 18),
        conv2_w=conv_w(ks[2], 18, 18), conv2_b=bias(ks[3], 18),
        conv3_w=conv_w(ks[4], 18, 18), conv3_b=bias(ks[5], 18),
        conv4_w=conv_w(ks[6], 18, 18), conv4_b=bias(ks[7], 18),
        fc1_w=lin_w(ks[8], num_inputs, 64), fc1_b=bias(ks[9], 64),
        fc2_w=lin_w(ks[10], 64, 64),        fc2_b=bias(ks[11], 64),
        agent1_w=lin_w(ks[12], 64, num_outputs), agent1_b=bias(ks[13], num_outputs),
        agent2_w=lin_w(ks[14], 64, num_outputs), agent2_b=bias(ks[15], num_outputs),
    )


# ----------------------------- pure-JAX reference ---------------------------

def _reference_forward(params, states, scores, times, agents):
    x = jnp.transpose(states, (0, 2, 3, 1)).astype(jnp.float32)

    def conv(x, w, b):
        dn = lax.conv_dimension_numbers(x.shape, w.shape, ("NHWC", "HWIO", "NHWC"))
        return lax.conv_general_dilated(x, w, (1, 1), "VALID",
                                        dimension_numbers=dn) + b.reshape(1, 1, 1, -1)

    x = conv(x, params["conv1_w"], params["conv1_b"])
    x = conv(x, params["conv2_w"], params["conv2_b"])
    x = lax.reduce_window(x, -jnp.inf, lax.max, (1, 2, 2, 1), (1, 2, 2, 1), "VALID")
    x = conv(x, params["conv3_w"], params["conv3_b"])
    x = conv(x, params["conv4_w"], params["conv4_b"])
    x = lax.reduce_window(x, 0.0, lax.add, (1, 2, 2, 1), (1, 2, 2, 1), "VALID") * 0.25
    feat = x.reshape(x.shape[0], -1)
    h = jnp.concatenate([feat, scores, times], axis=1)
    h = jnp.tanh(h @ params["fc1_w"] + params["fc1_b"])
    h = jnp.tanh(h @ params["fc2_w"] + params["fc2_b"])
    l1 = h @ params["agent1_w"] + params["agent1_b"]
    l2 = h @ params["agent2_w"] + params["agent2_b"]
    logits = jnp.where(agents.reshape(-1, 1) == 0, l1, l2)
    return jax.nn.softmax(logits, axis=-1)


# ----------------------------------- main ------------------------------------

if __name__ == "__main__":
    key = jax.random.PRNGKey(0)
    k_states, k_scores, k_times, k_params = jax.random.split(key, 4)

    N = 2
    states = jax.random.normal(k_states, (N, 6, 16, 16), jnp.float32)
    scores = jax.random.normal(k_scores, (N, 1), jnp.float32)
    times = jax.random.normal(k_times, (N, 1), jnp.float32)
    agents = jnp.array([0, 1], dtype=jnp.int32)   # sample 0 -> agent1, sample 1 -> agent2

    num_inputs = 18 + 1 + 1    # flattened conv features + scores + times
    num_outputs = 4
    params = init_params(k_params, num_inputs, num_outputs)

    probs = jax.jit(actor_network_forward)(params, states, scores, times, agents)
    probs = jax.block_until_ready(probs)

    assert probs.shape == (N, num_outputs) and probs.dtype == jnp.float32
    assert bool(jnp.all(jnp.isfinite(probs)))
    # approx reciprocal in the softmax -> sums to 1 up to the EUP approximation
    assert bool(jnp.allclose(jnp.sum(probs, axis=-1), 1.0, atol=5e-3))

    ref = _reference_forward(params, states, scores, times, agents)
    assert bool(jnp.allclose(probs, ref, atol=2e-2, rtol=2e-2)), "mismatch vs JAX reference"

    print("KERNEL_OK")
</pallas_src>

<mosaic_0001>
module attributes {stable_mosaic.version = 11 : i64} {
  func.func @actor_fused_kernel(%arg0: i32, %arg1: memref<1x8x256xf32, #tpu.memory_space<vmem>>, %arg2: memref<1x2x1xf32, #tpu.memory_space<vmem>>, %arg3: memref<1x1x1xi32, #tpu.memory_space<vmem>>, %arg4: memref<24x72xbf16, #tpu.memory_space<vmem>>, %arg5: memref<24x1xf32, #tpu.memory_space<vmem>>, %arg6: memref<24x216xbf16, #tpu.memory_space<vmem>>, %arg7: memref<24x1xf32, #tpu.memory_space<vmem>>, %arg8: memref<24x216xbf16, #tpu.memory_space<vmem>>, %arg9: memref<24x1xf32, #tpu.memory_space<vmem>>, %arg10: memref<24x216xbf16, #tpu.memory_space<vmem>>, %arg11: memref<24x1xf32, #tpu.memory_space<vmem>>, %arg12: memref<64x24xbf16, #tpu.memory_space<vmem>>, %arg13: memref<64x2xbf16, #tpu.memory_space<vmem>>, %arg14: memref<64x1xf32, #tpu.memory_space<vmem>>, %arg15: memref<64x64xbf16, #tpu.memory_space<vmem>>, %arg16: memref<64x1xf32, #tpu.memory_space<vmem>>, %arg17: memref<4x64xbf16, #tpu.memory_space<vmem>>, %arg18: memref<4x1xf32, #tpu.memory_space<vmem>>, %arg19: memref<4x64xbf16, #tpu.memory_space<vmem>>, %arg20: memref<4x1xf32, #tpu.memory_space<vmem>>, %arg21: memref<1x4x1xf32, #tpu.memory_space<vmem>>) attributes {dimension_semantics = [#tpu.dimension_semantics<parallel>], iteration_bounds = array<i64: 2>, scalar_prefetch = 0 : i64, scratch_operands = 0 : i64, tpu.core_type = #tpu.core_type<tc>, window_params = [{transform_indices = @transform_0, window_bounds = array<i64: 1, 8, 256>}, {transform_indices = @transform_1, window_bounds = array<i64: 1, 2, 1>}, {transform_indices = @transform_2, window_bounds = array<i64: 1, 1, 1>}, {pipeline_mode = #tpu.pipeline_mode<synchronous>, transform_indices = @transform_3, window_bounds = array<i64: 24, 72>}, {pipeline_mode = #tpu.pipeline_mode<synchronous>, transform_indices = @transform_4, window_bounds = array<i64: 24, 1>}, {pipeline_mode = #tpu.pipeline_mode<synchronous>, transform_indices = @transform_5, window_bounds = array<i64: 24, 216>}, {pipeline_mode = #tpu.pipeline_mode<synchronous>, transform_indices = @transform_6, window_bounds = array<i64: 24, 1>}, {pipeline_mode = #tpu.pipeline_mode<synchronous>, transform_indices = @transform_7, window_bounds = array<i64: 24, 216>}, {pipeline_mode = #tpu.pipeline_mode<synchronous>, transform_indices = @transform_8, window_bounds = array<i64: 24, 1>}, {pipeline_mode = #tpu.pipeline_mode<synchronous>, transform_indices = @transform_9, window_bounds = array<i64: 24, 216>}, {pipeline_mode = #tpu.pipeline_mode<synchronous>, transform_indices = @transform_10, window_bounds = array<i64: 24, 1>}, {pipeline_mode = #tpu.pipeline_mode<synchronous>, transform_indices = @transform_11, window_bounds = array<i64: 64, 24>}, {pipeline_mode = #tpu.pipeline_mode<synchronous>, transform_indices = @transform_12, window_bounds = array<i64: 64, 2>}, {pipeline_mode = #tpu.pipeline_mode<synchronous>, transform_indices = @transform_13, window_bounds = array<i64: 64, 1>}, {pipeline_mode = #tpu.pipeline_mode<synchronous>, transform_indices = @transform_14, window_bounds = array<i64: 64, 64>}, {pipeline_mode = #tpu.pipeline_mode<synchronous>, transform_indices = @transform_15, window_bounds = array<i64: 64, 1>}, {pipeline_mode = #tpu.pipeline_mode<synchronous>, transform_indices = @transform_16, window_bounds = array<i64: 4, 64>}, {pipeline_mode = #tpu.pipeline_mode<synchronous>, transform_indices = @transform_17, window_bounds = array<i64: 4, 1>}, {pipeline_mode = #tpu.pipeline_mode<synchronous>, transform_indices = @transform_18, window_bounds = array<i64: 4, 64>}, {pipeline_mode = #tpu.pipeline_mode<synchronous>, transform_indices = @transform_19, window_bounds = array<i64: 4, 1>}, {transform_indices = @transform_20, window_bounds = array<i64: 1, 4, 1>}]} {
    %c0 = arith.constant 0 : index
    %c0_0 = arith.constant 0 : index
    %c0_1 = arith.constant 0 : index
    %0 = vector.load %arg1[%c0, %c0_0, %c0_1] : memref<1x8x256xf32, #tpu.memory_space<vmem>>, vector<1x8x256xf32>
    %1 = vector.shape_cast %0 : vector<1x8x256xf32> to vector<8x256xf32>
    %2 = vector.extract_strided_slice %1 {offsets = [0, 1], sizes = [8, 255], strides = [1, 1]} : vector<8x256xf32> to vector<8x255xf32>
    %3 = vector.extract_strided_slice %1 {offsets = [0, 0], sizes = [8, 1], strides = [1, 1]} : vector<8x256xf32> to vector<8x1xf32>
    %4 = tpu.concatenate %2, %3 in 1 : vector<8x255xf32>, vector<8x1xf32> -> vector<8x256xf32>
    %5 = vector.extract_strided_slice %1 {offsets = [0, 2], sizes = [8, 254], strides = [1, 1]} : vector<8x256xf32> to vector<8x254xf32>
    %6 = vector.extract_strided_slice %1 {offsets = [0, 0], sizes = [8, 2], strides = [1, 1]} : vector<8x256xf32> to vector<8x2xf32>
    %7 = tpu.concatenate %5, %6 in 1 : vector<8x254xf32>, vector<8x2xf32> -> vector<8x256xf32>
    %8 = vector.extract_strided_slice %1 {offsets = [0, 16], sizes = [8, 240], strides = [1, 1]} : vector<8x256xf32> to vector<8x240xf32>
    %9 = vector.extract_strided_slice %1 {offsets = [0, 0], sizes = [8, 16], strides = [1, 1]} : vector<8x256xf32> to vector<8x16xf32>
    %10 = tpu.concatenate %8, %9 in 1 : vector<8x240xf32>, vector<8x16xf32> -> vector<8x256xf32>
    %11 = vector.extract_strided_slice %1 {offsets = [0, 17], sizes = [8, 239], strides = [1, 1]} : vector<8x256xf32> to vector<8x239xf32>
    %12 = vector.extract_strided_slice %1 {offsets = [0, 0], sizes = [8, 17], strides = [1, 1]} : vector<8x256xf32> to vector<8x17xf32>
    %13 = tpu.concatenate %11, %12 in 1 : vector<8x239xf32>, vector<8x17xf32> -> vector<8x256xf32>
    %14 = vector.extract_strided_slice %1 {offsets = [0, 18], sizes = [8, 238], strides = [1, 1]} : vector<8x256xf32> to vector<8x238xf32>
    %15 = vector.extract_strided_slice %1 {offsets = [0, 0], sizes = [8, 18], strides = [1, 1]} : vector<8x256xf32> to vector<8x18xf32>
    %16 = tpu.concatenate %14, %15 in 1 : vector<8x238xf32>, vector<8x18xf32> -> vector<8x256xf32>
    %17 = vector.extract_strided_slice %1 {offsets = [0, 32], sizes = [8, 224], strides = [1, 1]} : vector<8x256xf32> to vector<8x224xf32>
    %18 = vector.extract_strided_slice %1 {offsets = [0, 0], sizes = [8, 32], strides = [1, 1]} : vector<8x256xf32> to vector<8x32xf32>
    %19 = tpu.concatenate %17, %18 in 1 : vector<8x224xf32>, vector<8x32xf32> -> vector<8x256xf32>
    %20 = vector.extract_strided_slice %1 {offsets = [0, 33], sizes = [8, 223], strides = [1, 1]} : vector<8x256xf32> to vector<8x223xf32>
    %21 = vector.extract_strided_slice %1 {offsets = [0, 0], sizes = [8, 33], strides = [1, 1]} : vector<8x256xf32> to vector<8x33xf32>
    %22 = tpu.concatenate %20, %21 in 1 : vector<8x223xf32>, vector<8x33xf32> -> vector<8x256xf32>
    %23 = vector.extract_strided_slice %1 {offsets = [0, 34], sizes = [8, 222], strides = [1, 1]} : vector<8x256xf32> to vector<8x222xf32>
    %24 = vector.extract_strided_slice %1 {offsets = [0, 0], sizes = [8, 34], strides = [1, 1]} : vector<8x256xf32> to vector<8x34xf32>
    %25 = tpu.concatenate %23, %24 in 1 : vector<8x222xf32>, vector<8x34xf32> -> vector<8x256xf32>
    %26 = tpu.concatenate %1, %4, %7, %10, %13, %16, %19, %22, %25 in 0 : vector<8x256xf32>, vector<8x256xf32>, vector<8x256xf32>, vector<8x256xf32>, vector<8x256xf32>, vector<8x256xf32>, vector<8x256xf32>, vector<8x256xf32>, vector<8x256xf32> -> vector<72x256xf32>
    %27 = arith.truncf %26 : vector<72x256xf32> to vector<72x256xbf16>
    %c0_2 = arith.constant 0 : index
    %c0_3 = arith.constant 0 : index
    %28 = vector.load %arg4[%c0_2, %c0_3] : memref<24x72xbf16, #tpu.memory_space<vmem>>, vector<24x72xbf16>
    %cst = arith.constant dense<0.000000e+00> : vector<24x256xf32>
    %29 = tpu.matmul %28, %27, %cst {dimension_numbers = #tpu.dot_dimension_numbers<[1], [0], [0], [1], [0, 0, 1, 1], [], []>} : vector<24x72xbf16>, vector<72x256xbf16>, vector<24x256xf32> -> vector<24x256xf32>
    %c0_4 = arith.constant 0 : index
    %c0_5 = arith.constant 0 : index
    %30 = vector.load %arg5[%c0_4, %c0_5] : memref<24x1xf32, #tpu.memory_space<vmem>>, vector<24x1xf32>
    %31 = vector.broadcast %30 : vector<24x1xf32> to vector<24x256xf32>
    %32 = arith.addf %29, %31 : vector<24x256xf32>
    %33 = vector.extract_strided_slice %32 {offsets = [0, 1], sizes = [24, 255], strides = [1, 1]} : vector<24x256xf32> to vector<24x255xf32>
    %34 = vector.extract_strided_slice %32 {offsets = [0, 0], sizes = [24, 1], strides = [1, 1]} : vector<24x256xf32> to vector<24x1xf32>
    %35 = tpu.concatenate %33, %34 in 1 : vector<24x255xf32>, vector<24x1xf32> -> vector<24x256xf32>
    %36 = vector.extract_strided_slice %32 {offsets = [0, 2], sizes = [24, 254], strides = [1, 1]} : vector<24x256xf32> to vector<24x254xf32>
    %37 = vector.extract_strided_slice %32 {offsets = [0, 0], sizes = [24, 2], strides = [1, 1]} : vector<24x256xf32> to vector<24x2xf32>
    %38 = tpu.concatenate %36, %37 in 1 : vector<24x254xf32>, vector<24x2xf32> -> vector<24x256xf32>
    %39 = vector.extract_strided_slice %32 {offsets = [0, 16], sizes = [24, 240], strides = [1, 1]} : vector<24x256xf32> to vector<24x240xf32>
    %40 = vector.extract_strided_slice %32 {offsets = [0, 0], sizes = [24, 16], strides = [1, 1]} : vector<24x256xf32> to vector<24x16xf32>
    %41 = tpu.concatenate %39, %40 in 1 : vector<24x240xf32>, vector<24x16xf32> -> vector<24x256xf32>
    %42 = vector.extract_strided_slice %32 {offsets = [0, 17], sizes = [24, 239], strides = [1, 1]} : vector<24x256xf32> to vector<24x239xf32>
    %43 = vector.extract_strided_slice %32 {offsets = [0, 0], sizes = [24, 17], strides = [1, 1]} : vector<24x256xf32> to vector<24x17xf32>
    %44 = tpu.concatenate %42, %43 in 1 : vector<24x239xf32>, vector<24x17xf32> -> vector<24x256xf32>
    %45 = vector.extract_strided_slice %32 {offsets = [0, 18], sizes = [24, 238], strides = [1, 1]} : vector<24x256xf32> to vector<24x238xf32>
    %46 = vector.extract_strided_slice %32 {offsets = [0, 0], sizes = [24, 18], strides = [1, 1]} : vector<24x256xf32> to vector<24x18xf32>
    %47 = tpu.concatenate %45, %46 in 1 : vector<24x238xf32>, vector<24x18xf32> -> vector<24x256xf32>
    %48 = vector.extract_strided_slice %32 {offsets = [0, 32], sizes = [24, 224], strides = [1, 1]} : vector<24x256xf32> to vector<24x224xf32>
    %49 = vector.extract_strided_slice %32 {offsets = [0, 0], sizes = [24, 32], strides = [1, 1]} : vector<24x256xf32> to vector<24x32xf32>
    %50 = tpu.concatenate %48, %49 in 1 : vector<24x224xf32>, vector<24x32xf32> -> vector<24x256xf32>
    %51 = vector.extract_strided_slice %32 {offsets = [0, 33], sizes = [24, 223], strides = [1, 1]} : vector<24x256xf32> to vector<24x223xf32>
    %52 = vector.extract_strided_slice %32 {offsets = [0, 0], sizes = [24, 33], strides = [1, 1]} : vector<24x256xf32> to vector<24x33xf32>
    %53 = tpu.concatenate %51, %52 in 1 : vector<24x223xf32>, vector<24x33xf32> -> vector<24x256xf32>
    %54 = vector.extract_strided_slice %32 {offsets = [0, 34], sizes = [24, 222], strides = [1, 1]} : vector<24x256xf32> to vector<24x222xf32>
    %55 = vector.extract_strided_slice %32 {offsets = [0, 0], sizes = [24, 34], strides = [1, 1]} : vector<24x256xf32> to vector<24x34xf32>
    %56 = tpu.concatenate %54, %55 in 1 : vector<24x222xf32>, vector<24x34xf32> -> vector<24x256xf32>
    %57 = tpu.concatenate %32, %35, %38, %41, %44, %47, %50, %53, %56 in 0 : vector<24x256xf32>, vector<24x256xf32>, vector<24x256xf32>, vector<24x256xf32>, vector<24x256xf32>, vector<24x256xf32>, vector<24x256xf32>, vector<24x256xf32>, vector<24x256xf32> -> vector<216x256xf32>
    %58 = arith.truncf %57 : vector<216x256xf32> to vector<216x256xbf16>
    %c0_6 = arith.constant 0 : index
    %c0_7 = arith.constant 0 : index
    %59 = vector.load %arg6[%c0_6, %c0_7] : memref<24x216xbf16, #tpu.memory_space<vmem>>, vector<24x216xbf16>
    %cst_8 = arith.constant dense<0.000000e+00> : vector<24x256xf32>
    %60 = tpu.matmul %59, %58, %cst_8 {dimension_numbers = #tpu.dot_dimension_numbers<[1], [0], [0], [1], [0, 0, 1, 1], [], []>} : vector<24x216xbf16>, vector<216x256xbf16>, vector<24x256xf32> -> vector<24x256xf32>
    %c0_9 = arith.constant 0 : index
    %c0_10 = arith.constant 0 : index
    %61 = vector.load %arg7[%c0_9, %c0_10] : memref<24x1xf32, #tpu.memory_space<vmem>>, vector<24x1xf32>
    %62 = vector.broadcast %61 : vector<24x1xf32> to vector<24x256xf32>
    %63 = arith.addf %60, %62 : vector<24x256xf32>
    %64 = vector.extract_strided_slice %63 {offsets = [0, 1], sizes = [24, 255], strides = [1, 1]} : vector<24x256xf32> to vector<24x255xf32>
    %65 = vector.extract_strided_slice %63 {offsets = [0, 0], sizes = [24, 1], strides = [1, 1]} : vector<24x256xf32> to vector<24x1xf32>
    %66 = tpu.concatenate %64, %65 in 1 : vector<24x255xf32>, vector<24x1xf32> -> vector<24x256xf32>
    %67 = arith.maximumf %63, %66 : vector<24x256xf32>
    %68 = vector.extract_strided_slice %63 {offsets = [0, 16], sizes = [24, 240], strides = [1, 1]} : vector<24x256xf32> to vector<24x240xf32>
    %69 = vector.extract_strided_slice %63 {offsets = [0, 0], sizes = [24, 16], strides = [1, 1]} : vector<24x256xf32> to vector<24x16xf32>
    %70 = tpu.concatenate %68, %69 in 1 : vector<24x240xf32>, vector<24x16xf32> -> vector<24x256xf32>
    %71 = vector.extract_strided_slice %63 {offsets = [0, 17], sizes = [24, 239], strides = [1, 1]} : vector<24x256xf32> to vector<24x239xf32>
    %72 = vector.extract_strided_slice %63 {offsets = [0, 0], sizes = [24, 17], strides = [1, 1]} : vector<24x256xf32> to vector<24x17xf32>
    %73 = tpu.concatenate %71, %72 in 1 : vector<24x239xf32>, vector<24x17xf32> -> vector<24x256xf32>
    %74 = arith.maximumf %70, %73 : vector<24x256xf32>
    %75 = arith.maximumf %67, %74 : vector<24x256xf32>
    %76 = vector.extract_strided_slice %75 {offsets = [0, 2], sizes = [24, 254], strides = [1, 1]} : vector<24x256xf32> to vector<24x254xf32>
    %77 = vector.extract_strided_slice %75 {offsets = [0, 0], sizes = [24, 2], strides = [1, 1]} : vector<24x256xf32> to vector<24x2xf32>
    %78 = tpu.concatenate %76, %77 in 1 : vector<24x254xf32>, vector<24x2xf32> -> vector<24x256xf32>
    %79 = vector.extract_strided_slice %75 {offsets = [0, 4], sizes = [24, 252], strides = [1, 1]} : vector<24x256xf32> to vector<24x252xf32>
    %80 = vector.extract_strided_slice %75 {offsets = [0, 0], sizes = [24, 4], strides = [1, 1]} : vector<24x256xf32> to vector<24x4xf32>
    %81 = tpu.concatenate %79, %80 in 1 : vector<24x252xf32>, vector<24x4xf32> -> vector<24x256xf32>
    %82 = vector.extract_strided_slice %75 {offsets = [0, 32], sizes = [24, 224], strides = [1, 1]} : vector<24x256xf32> to vector<24x224xf32>
    %83 = vector.extract_strided_slice %75 {offsets = [0, 0], sizes = [24, 32], strides = [1, 1]} : vector<24x256xf32> to vector<24x32xf32>
    %84 = tpu.concatenate %82, %83 in 1 : vector<24x224xf32>, vector<24x32xf32> -> vector<24x256xf32>
    %85 = vector.extract_strided_slice %75 {offsets = [0, 34], sizes = [24, 222], strides = [1, 1]} : vector<24x256xf32> to vector<24x222xf32>
    %86 = vector.extract_strided_slice %75 {offsets = [0, 0], sizes = [24, 34], strides = [1, 1]} : vector<24x256xf32> to vector<24x34xf32>
    %87 = tpu.concatenate %85, %86 in 1 : vector<24x222xf32>, vector<24x34xf32> -> vector<24x256xf32>
    %88 = vector.extract_strided_slice %75 {offsets = [0, 36], sizes = [24, 220], strides = [1, 1]} : vector<24x256xf32> to vector<24x220xf32>
    %89 = vector.extract_strided_slice %75 {offsets = [0, 0], sizes = [24, 36], strides = [1, 1]} : vector<24x256xf32> to vector<24x36xf32>
    %90 = tpu.concatenate %88, %89 in 1 : vector<24x220xf32>, vector<24x36xf32> -> vector<24x256xf32>
    %91 = vector.extract_strided_slice %75 {offsets = [0, 64], sizes = [24, 192], strides = [1, 1]} : vector<24x256xf32> to vector<24x192xf32>
    %92 = vector.extract_strided_slice %75 {offsets = [0, 0], sizes = [24, 64], strides = [1, 1]} : vector<24x256xf32> to vector<24x64xf32>
    %93 = tpu.concatenate %91, %92 in 1 : vector<24x192xf32>, vector<24x64xf32> -> vector<24x256xf32>
    %94 = vector.extract_strided_slice %75 {offsets = [0, 66], sizes = [24, 190], strides = [1, 1]} : vector<24x256xf32> to vector<24x190xf32>
    %95 = vector.extract_strided_slice %75 {offsets = [0, 0], sizes = [24, 66], strides = [1, 1]} : vector<24x256xf32> to vector<24x66xf32>
    %96 = tpu.concatenate %94, %95 in 1 : vector<24x190xf32>, vector<24x66xf32> -> vector<24x256xf32>
    %97 = vector.extract_strided_slice %75 {offsets = [0, 68], sizes = [24, 188], strides = [1, 1]} : vector<24x256xf32> to vector<24x188xf32>
    %98 = vector.extract_strided_slice %75 {offsets = [0, 0], sizes = [24, 68], strides = [1, 1]} : vector<24x256xf32> to vector<24x68xf32>
    %99 = tpu.concatenate %97, %98 in 1 : vector<24x188xf32>, vector<24x68xf32> -> vector<24x256xf32>
    %100 = tpu.concatenate %75, %78, %81, %84, %87, %90, %93, %96, %99 in 0 : vector<24x256xf32>, vector<24x256xf32>, vector<24x256xf32>, vector<24x256xf32>, vector<24x256xf32>, vector<24x256xf32>, vector<24x256xf32>, vector<24x256xf32>, vector<24x256xf32> -> vector<216x256xf32>
    %101 = arith.truncf %100 : vector<216x256xf32> to vector<216x256xbf16>
    %c0_11 = arith.constant 0 : index
    %c0_12 = arith.constant 0 : index
    %102 = vector.load %arg8[%c0_11, %c0_12] : memref<24x216xbf16, #tpu.memory_space<vmem>>, vector<24x216xbf16>
    %cst_13 = arith.constant dense<0.000000e+00> : vector<24x256xf32>
    %103 = tpu.matmul %102, %101, %cst_13 {dimension_numbers = #tpu.dot_dimension_numbers<[1], [0], [0], [1], [0, 0, 1, 1], [], []>} : vector<24x216xbf16>, vector<216x256xbf16>, vector<24x256xf32> -> vector<24x256xf32>
    %c0_14 = arith.constant 0 : index
    %c0_15 = arith.constant 0 : index
    %104 = vector.load %arg9[%c0_14, %c0_15] : memref<24x1xf32, #tpu.memory_space<vmem>>, vector<24x1xf32>
    %105 = vector.broadcast %104 : vector<24x1xf32> to vector<24x256xf32>
    %106 = arith.addf %103, %105 : vector<24x256xf32>
    %107 = vector.extract_strided_slice %106 {offsets = [0, 2], sizes = [24, 254], strides = [1, 1]} : vector<24x256xf32> to vector<24x254xf32>
    %108 = vector.extract_strided_slice %106 {offsets = [0, 0], sizes = [24, 2], strides = [1, 1]} : vector<24x256xf32> to vector<24x2xf32>
    %109 = tpu.concatenate %107, %108 in 1 : vector<24x254xf32>, vector<24x2xf32> -> vector<24x256xf32>
    %110 = vector.extract_strided_slice %106 {offsets = [0, 4], sizes = [24, 252], strides = [1, 1]} : vector<24x256xf32> to vector<24x252xf32>
    %111 = vector.extract_strided_slice %106 {offsets = [0, 0], sizes = [24, 4], strides = [1, 1]} : vector<24x256xf32> to vector<24x4xf32>
    %112 = tpu.concatenate %110, %111 in 1 : vector<24x252xf32>, vector<24x4xf32> -> vector<24x256xf32>
    %113 = vector.extract_strided_slice %106 {offsets = [0, 32], sizes = [24, 224], strides = [1, 1]} : vector<24x256xf32> to vector<24x224xf32>
    %114 = vector.extract_strided_slice %106 {offsets = [0, 0], sizes = [24, 32], strides = [1, 1]} : vector<24x256xf32> to vector<24x32xf32>
    %115 = tpu.concatenate %113, %114 in 1 : vector<24x224xf32>, vector<24x32xf32> -> vector<24x256xf32>
    %116 = vector.extract_strided_slice %106 {offsets = [0, 34], sizes = [24, 222], strides = [1, 1]} : vector<24x256xf32> to vector<24x222xf32>
    %117 = vector.extract_strided_slice %106 {offsets = [0, 0], sizes = [24, 34], strides = [1, 1]} : vector<24x256xf32> to vector<24x34xf32>
    %118 = tpu.concatenate %116, %117 in 1 : vector<24x222xf32>, vector<24x34xf32> -> vector<24x256xf32>
    %119 = vector.extract_strided_slice %106 {offsets = [0, 36], sizes = [24, 220], strides = [1, 1]} : vector<24x256xf32> to vector<24x220xf32>
    %120 = vector.extract_strided_slice %106 {offsets = [0, 0], sizes = [24, 36], strides = [1, 1]} : vector<24x256xf32> to vector<24x36xf32>
    %121 = tpu.concatenate %119, %120 in 1 : vector<24x220xf32>, vector<24x36xf32> -> vector<24x256xf32>
    %122 = vector.extract_strided_slice %106 {offsets = [0, 64], sizes = [24, 192], strides = [1, 1]} : vector<24x256xf32> to vector<24x192xf32>
    %123 = vector.extract_strided_slice %106 {offsets = [0, 0], sizes = [24, 64], strides = [1, 1]} : vector<24x256xf32> to vector<24x64xf32>
    %124 = tpu.concatenate %122, %123 in 1 : vector<24x192xf32>, vector<24x64xf32> -> vector<24x256xf32>
    %125 = vector.extract_strided_slice %106 {offsets = [0, 66], sizes = [24, 190], strides = [1, 1]} : vector<24x256xf32> to vector<24x190xf32>
    %126 = vector.extract_strided_slice %106 {offsets = [0, 0], sizes = [24, 66], strides = [1, 1]} : vector<24x256xf32> to vector<24x66xf32>
    %127 = tpu.concatenate %125, %126 in 1 : vector<24x190xf32>, vector<24x66xf32> -> vector<24x256xf32>
    %128 = vector.extract_strided_slice %106 {offsets = [0, 68], sizes = [24, 188], strides = [1, 1]} : vector<24x256xf32> to vector<24x188xf32>
    %129 = vector.extract_strided_slice %106 {offsets = [0, 0], sizes = [24, 68], strides = [1, 1]} : vector<24x256xf32> to vector<24x68xf32>
    %130 = tpu.concatenate %128, %129 in 1 : vector<24x188xf32>, vector<24x68xf32> -> vector<24x256xf32>
    %131 = tpu.concatenate %106, %109, %112, %115, %118, %121, %124, %127, %130 in 0 : vector<24x256xf32>, vector<24x256xf32>, vector<24x256xf32>, vector<24x256xf32>, vector<24x256xf32>, vector<24x256xf32>, vector<24x256xf32>, vector<24x256xf32>, vector<24x256xf32> -> vector<216x256xf32>
    %132 = arith.truncf %131 : vector<216x256xf32> to vector<216x256xbf16>
    %c0_16 = arith.constant 0 : index
    %c0_17 = arith.constant 0 : index
    %133 = vector.load %arg10[%c0_16, %c0_17] : memref<24x216xbf16, #tpu.memory_space<vmem>>, vector<24x216xbf16>
    %cst_18 = arith.constant dense<0.000000e+00> : vector<24x256xf32>
    %134 = tpu.matmul %133, %132, %cst_18 {dimension_numbers = #tpu.dot_dimension_numbers<[1], [0], [0], [1], [0, 0, 1, 1], [], []>} : vector<24x216xbf16>, vector<216x256xbf16>, vector<24x256xf32> -> vector<24x256xf32>
    %c0_19 = arith.constant 0 : index
    %c0_20 = arith.constant 0 : index
    %135 = vector.load %arg11[%c0_19, %c0_20] : memref<24x1xf32, #tpu.memory_space<vmem>>, vector<24x1xf32>
    %136 = vector.broadcast %135 : vector<24x1xf32> to vector<24x256xf32>
    %137 = arith.addf %134, %136 : vector<24x256xf32>
    %138 = vector.extract_strided_slice %137 {offsets = [0, 0], sizes = [24, 1], strides = [1, 1]} : vector<24x256xf32> to vector<24x1xf32>
    %139 = vector.extract_strided_slice %137 {offsets = [0, 2], sizes = [24, 1], strides = [1, 1]} : vector<24x256xf32> to vector<24x1xf32>
    %140 = arith.addf %138, %139 : vector<24x1xf32>
    %141 = vector.extract_strided_slice %137 {offsets = [0, 32], sizes = [24, 1], strides = [1, 1]} : vector<24x256xf32> to vector<24x1xf32>
    %142 = arith.addf %140, %141 : vector<24x1xf32>
    %143 = vector.extract_strided_slice %137 {offsets = [0, 34], sizes = [24, 1], strides = [1, 1]} : vector<24x256xf32> to vector<24x1xf32>
    %144 = arith.addf %142, %143 : vector<24x1xf32>
    %cst_21 = arith.constant 2.500000e-01 : f32
    %145 = vector.broadcast %cst_21 : f32 to vector<24x1xf32>
    %146 = arith.mulf %145, %144 : vector<24x1xf32>
    %c0_22 = arith.constant 0 : index
    %c0_23 = arith.constant 0 : index
    %c0_24 = arith.constant 0 : index
    %147 = vector.load %arg2[%c0_22, %c0_23, %c0_24] : memref<1x2x1xf32, #tpu.memory_space<vmem>>, vector<1x2x1xf32>
    %148 = vector.shape_cast %147 : vector<1x2x1xf32> to vector<2x1xf32>
    %149 = arith.truncf %148 : vector<2x1xf32> to vector<2x1xbf16>
    %c0_25 = arith.constant 0 : index
    %c0_26 = arith.constant 0 : index
    %150 = vector.load %arg12[%c0_25, %c0_26] : memref<64x24xbf16, #tpu.memory_space<vmem>>, vector<64x24xbf16>
    %151 = arith.truncf %146 : vector<24x1xf32> to vector<24x1xbf16>
    %cst_27 = arith.constant dense<0.000000e+00> : vector<64x1xf32>
    %152 = tpu.matmul %150, %151, %cst_27 {dimension_numbers = #tpu.dot_dimension_numbers<[1], [0], [0], [1], [0, 0, 1, 1], [], []>} : vector<64x24xbf16>, vector<24x1xbf16>, vector<64x1xf32> -> vector<64x1xf32>
    %c0_28 = arith.constant 0 : index
    %c0_29 = arith.constant 0 : index
    %153 = vector.load %arg13[%c0_28, %c0_29] : memref<64x2xbf16, #tpu.memory_space<vmem>>, vector<64x2xbf16>
    %cst_30 = arith.constant dense<0.000000e+00> : vector<64x1xf32>
    %154 = tpu.matmul %153, %149, %cst_30 {dimension_numbers = #tpu.dot_dimension_numbers<[1], [0], [0], [1], [0, 0, 1, 1], [], []>} : vector<64x2xbf16>, vector<2x1xbf16>, vector<64x1xf32> -> vector<64x1xf32>
    %155 = arith.addf %152, %154 : vector<64x1xf32>
    %c0_31 = arith.constant 0 : index
    %c0_32 = arith.constant 0 : index
    %156 = vector.load %arg14[%c0_31, %c0_32] : memref<64x1xf32, #tpu.memory_space<vmem>>, vector<64x1xf32>
    %157 = arith.addf %155, %156 : vector<64x1xf32>
    %158 = math.tanh %157 : vector<64x1xf32>
    %c0_33 = arith.constant 0 : index
    %c0_34 = arith.constant 0 : index
    %159 = vector.load %arg15[%c0_33, %c0_34] : memref<64x64xbf16, #tpu.memory_space<vmem>>, vector<64x64xbf16>
    %160 = arith.truncf %158 : vector<64x1xf32> to vector<64x1xbf16>
    %cst_35 = arith.constant dense<0.000000e+00> : vector<64x1xf32>
    %161 = tpu.matmul %159, %160, %cst_35 {dimension_numbers = #tpu.dot_dimension_numbers<[1], [0], [0], [1], [0, 0, 1, 1], [], []>} : vector<64x64xbf16>, vector<64x1xbf16>, vector<64x1xf32> -> vector<64x1xf32>
    %c0_36 = arith.constant 0 : index
    %c0_37 = arith.constant 0 : index
    %162 = vector.load %arg16[%c0_36, %c0_37] : memref<64x1xf32, #tpu.memory_space<vmem>>, vector<64x1xf32>
    %163 = arith.addf %161, %162 : vector<64x1xf32>
    %164 = math.tanh %163 : vector<64x1xf32>
    %165 = arith.truncf %164 : vector<64x1xf32> to vector<64x1xbf16>
    %c0_38 = arith.constant 0 : index
    %c0_39 = arith.constant 0 : index
    %166 = vector.load %arg17[%c0_38, %c0_39] : memref<4x64xbf16, #tpu.memory_space<vmem>>, vector<4x64xbf16>
    %cst_40 = arith.constant dense<0.000000e+00> : vector<4x1xf32>
    %167 = tpu.matmul %166, %165, %cst_40 {dimension_numbers = #tpu.dot_dimension_numbers<[1], [0], [0], [1], [0, 0, 1, 1], [], []>} : vector<4x64xbf16>, vector<64x1xbf16>, vector<4x1xf32> -> vector<4x1xf32>
    %c0_41 = arith.constant 0 : index
    %c0_42 = arith.constant 0 : index
    %168 = vector.load %arg18[%c0_41, %c0_42] : memref<4x1xf32, #tpu.memory_space<vmem>>, vector<4x1xf32>
    %169 = arith.addf %167, %168 : vector<4x1xf32>
    %c0_43 = arith.constant 0 : index
    %c0_44 = arith.constant 0 : index
    %170 = vector.load %arg19[%c0_43, %c0_44] : memref<4x64xbf16, #tpu.memory_space<vmem>>, vector<4x64xbf16>
    %cst_45 = arith.constant dense<0.000000e+00> : vector<4x1xf32>
    %171 = tpu.matmul %170, %165, %cst_45 {dimension_numbers = #tpu.dot_dimension_numbers<[1], [0], [0], [1], [0, 0, 1, 1], [], []>} : vector<4x64xbf16>, vector<64x1xbf16>, vector<4x1xf32> -> vector<4x1xf32>
    %c0_46 = arith.constant 0 : index
    %c0_47 = arith.constant 0 : index
    %172 = vector.load %arg20[%c0_46, %c0_47] : memref<4x1xf32, #tpu.memory_space<vmem>>, vector<4x1xf32>
    %173 = arith.addf %171, %172 : vector<4x1xf32>
    %c0_48 = arith.constant 0 : index
    %c0_49 = arith.constant 0 : index
    %c0_50 = arith.constant 0 : index
    %174 = vector.load %arg3[%c0_48, %c0_49, %c0_50] : memref<1x1x1xi32, #tpu.memory_space<vmem>>, vector<1x1x1xi32>
    %175 = vector.shape_cast %174 : vector<1x1x1xi32> to vector<1x1xi32>
    %c0_i32 = arith.constant 0 : i32
    %176 = vector.broadcast %c0_i32 : i32 to vector<1x1xi32>
    %177 = arith.cmpi eq, %175, %176 : vector<1x1xi32>
    %178 = vector.shape_cast %177 : vector<1x1xi1> to vector<1x1xi1>
    %179 = vector.broadcast %178 : vector<1x1xi1> to vector<4x1xi1>
    %180 = arith.select %179, %169, %173 : vector<4x1xi1>, vector<4x1xf32>
    %cst_51 = arith.constant dense<0xFF800000> : vector<1xf32>
    %181 = vector.multi_reduction <maximumf>, %180, %cst_51 [0] : vector<4x1xf32> to vector<1xf32>
    %182 = vector.shape_cast %181 : vector<1xf32> to vector<1x1xf32>
    %183 = vector.broadcast %182 : vector<1x1xf32> to vector<4x1xf32>
    %184 = arith.subf %180, %183 : vector<4x1xf32>
    %185 = math.exp %184 : vector<4x1xf32>
    %cst_52 = arith.constant dense<0.000000e+00> : vector<1xf32>
    %186 = vector.multi_reduction <add>, %185, %cst_52 [0] : vector<4x1xf32> to vector<1xf32>
    %187 = vector.shape_cast %186 : vector<1xf32> to vector<1x1xf32>
    %188 = tpu.reciprocal %187 {approx = true} : vector<1x1xf32> -> vector<1x1xf32>
    %189 = vector.broadcast %188 : vector<1x1xf32> to vector<4x1xf32>
    %190 = arith.mulf %185, %189 : vector<4x1xf32>
    %c0_53 = arith.constant 0 : index
    %c0_54 = arith.constant 0 : index
    %c0_55 = arith.constant 0 : index
    %191 = vector.load %arg21[%c0_53, %c0_54, %c0_55] : memref<1x4x1xf32, #tpu.memory_space<vmem>>, vector<1x4x1xf32>
    %192 = vector.shape_cast %191 : vector<1x4x1xf32> to vector<4x1xf32>
    %193 = vector.shape_cast %190 : vector<4x1xf32> to vector<1x4x1xf32>
    tpu.vector_store %arg21[%c0_53, %c0_54, %c0_55], %193 {strides = array<i32>} : memref<1x4x1xf32, #tpu.memory_space<vmem>>, vector<1x4x1xf32>,
    return
  }
  func.func @transform_0(%arg0: i32) -> (i32, i32, i32) {
    %c0_i32 = arith.constant 0 : i32
    %c0_i32_0 = arith.constant 0 : i32
    %c0_i32_1 = arith.constant 0 : i32
    return %arg0, %c0_i32, %c0_i32_0 : i32, i32, i32
  }
  func.func @transform_1(%arg0: i32) -> (i32, i32, i32) {
    %c0_i32 = arith.constant 0 : i32
    %c0_i32_0 = arith.constant 0 : i32
    %c0_i32_1 = arith.constant 0 : i32
    return %arg0, %c0_i32, %c0_i32_0 : i32, i32, i32
  }
  func.func @transform_2(%arg0: i32) -> (i32, i32, i32) {
    %c0_i32 = arith.constant 0 : i32
    %c0_i32_0 = arith.constant 0 : i32
    %c0_i32_1 = arith.constant 0 : i32
    return %arg0, %c0_i32, %c0_i32_0 : i32, i32, i32
  }
  func.func @transform_3(%arg0: i32) -> (i32, i32) {
    %c0_i32 = arith.constant 0 : i32
    %c0_i32_0 = arith.constant 0 : i32
    %c0_i32_1 = arith.constant 0 : i32
    return %c0_i32, %c0_i32_0 : i32, i32
  }
  func.func @transform_4(%arg0: i32) -> (i32, i32) {
    %c0_i32 = arith.constant 0 : i32
    %c0_i32_0 = arith.constant 0 : i32
    %c0_i32_1 = arith.constant 0 : i32
    return %c0_i32, %c0_i32_0 : i32, i32
  }
  func.func @transform_5(%arg0: i32) -> (i32, i32) {
    %c0_i32 = arith.constant 0 : i32
    %c0_i32_0 = arith.constant 0 : i32
    %c0_i32_1 = arith.constant 0 : i32
    return %c0_i32, %c0_i32_0 : i32, i32
  }
  func.func @transform_6(%arg0: i32) -> (i32, i32) {
    %c0_i32 = arith.constant 0 : i32
    %c0_i32_0 = arith.constant 0 : i32
    %c0_i32_1 = arith.constant 0 : i32
    return %c0_i32, %c0_i32_0 : i32, i32
  }
  func.func @transform_7(%arg0: i32) -> (i32, i32) {
    %c0_i32 = arith.constant 0 : i32
    %c0_i32_0 = arith.constant 0 : i32
    %c0_i32_1 = arith.constant 0 : i32
    return %c0_i32, %c0_i32_0 : i32, i32
  }
  func.func @transform_8(%arg0: i32) -> (i32, i32) {
    %c0_i32 = arith.constant 0 : i32
    %c0_i32_0 = arith.constant 0 : i32
    %c0_i32_1 = arith.constant 0 : i32
    return %c0_i32, %c0_i32_0 : i32, i32
  }
  func.func @transform_9(%arg0: i32) -> (i32, i32) {
    %c0_i32 = arith.constant 0 : i32
    %c0_i32_0 = arith.constant 0 : i32
    %c0_i32_1 = arith.constant 0 : i32
    return %c0_i32, %c0_i32_0 : i32, i32
  }
  func.func @transform_10(%arg0: i32) -> (i32, i32) {
    %c0_i32 = arith.constant 0 : i32
    %c0_i32_0 = arith.constant 0 : i32
    %c0_i32_1 = arith.constant 0 : i32
    return %c0_i32, %c0_i32_0 : i32, i32
  }
  func.func @transform_11(%arg0: i32) -> (i32, i32) {
    %c0_i32 = arith.constant 0 : i32
    %c0_i32_0 = arith.constant 0 : i32
    %c0_i32_1 = arith.constant 0 : i32
    return %c0_i32, %c0_i32_0 : i32, i32
  }
  func.func @transform_12(%arg0: i32) -> (i32, i32) {
    %c0_i32 = arith.constant 0 : i32
    %c0_i32_0 = arith.constant 0 : i32
    %c0_i32_1 = arith.constant 0 : i32
    return %c0_i32, %c0_i32_0 : i32, i32
  }
  func.func @transform_13(%arg0: i32) -> (i32, i32) {
    %c0_i32 = arith.constant 0 : i32
    %c0_i32_0 = arith.constant 0 : i32
    %c0_i32_1 = arith.constant 0 : i32
    return %c0_i32, %c0_i32_0 : i32, i32
  }
  func.func @transform_14(%arg0: i32) -> (i32, i32) {
    %c0_i32 = arith.constant 0 : i32
    %c0_i32_0 = arith.constant 0 : i32
    %c0_i32_1 = arith.constant 0 : i32
    return %c0_i32, %c0_i32_0 : i32, i32
  }
  func.func @transform_15(%arg0: i32) -> (i32, i32) {
    %c0_i32 = arith.constant 0 : i32
    %c0_i32_0 = arith.constant 0 : i32
    %c0_i32_1 = arith.constant 0 : i32
    return %c0_i32, %c0_i32_0 : i32, i32
  }
  func.func @transform_16(%arg0: i32) -> (i32, i32) {
    %c0_i32 = arith.constant 0 : i32
    %c0_i32_0 = arith.constant 0 : i32
    %c0_i32_1 = arith.constant 0 : i32
    return %c0_i32, %c0_i32_0 : i32, i32
  }
  func.func @transform_17(%arg0: i32) -> (i32, i32) {
    %c0_i32 = arith.constant 0 : i32
    %c0_i32_0 = arith.constant 0 : i32
    %c0_i32_1 = arith.constant 0 : i32
    return %c0_i32, %c0_i32_0 : i32, i32
  }
  func.func @transform_18(%arg0: i32) -> (i32, i32) {
    %c0_i32 = arith.constant 0 : i32
    %c0_i32_0 = arith.constant 0 : i32
    %c0_i32_1 = arith.constant 0 : i32
    return %c0_i32, %c0_i32_0 : i32, i32
  }
  func.func @transform_19(%arg0: i32) -> (i32, i32) {
    %c0_i32 = arith.constant 0 : i32
    %c0_i32_0 = arith.constant 0 : i32
    %c0_i32_1 = arith.constant 0 : i32
    return %c0_i32, %c0_i32_0 : i32, i32
  }
  func.func @transform_20(%arg0: i32) -> (i32, i32, i32) {
    %c0_i32 = arith.constant 0 : i32
    %c0_i32_0 = arith.constant 0 : i32
    %c0_i32_1 = arith.constant 0 : i32
    return %arg0, %c0_i32, %c0_i32_0 : i32, i32, i32
  }
}

</mosaic_0001>

<bundles_post_ra>
// kernel: actor_network_forward.1
= control target key start
LH: loop header
LB: loop body
LE: loop exit
PB: predicated region body
PF: predicated region fallthrough
CT: control target
= control target key end

     0   :  { %s3969_s0 = inlined_call_operand.vmem [shape: f32[2,8,256], index: 0, kind: input, shape index: {}]   ;;  %s3970_s1 = inlined_call_operand.vmem [shape: f32[2,2,1], index: 1, kind: input, shape index: {}]   ;;  %s3971_s2 = inlined_call_operand.vmem [shape: s32[2,1,1], index: 2, kind: input, shape index: {}]   ;;  %s3972_s3 = inlined_call_operand.vmem [shape: bf16[24,72], index: 3, kind: input, shape index: {}]   ;;  %s3973_s4 = inlined_call_operand.vmem [shape: f32[24,1], index: 4, kind: input, shape index: {}]   ;;  %s3974_s5 = inlined_call_operand.vmem [shape: bf16[24,216], index: 5, kind: input, shape index: {}]   ;;  %s3975_s6 = inlined_call_operand.vmem [shape: f32[24,1], index: 6, kind: input, shape index: {}]   ;;  %s3976_s7 = inlined_call_operand.vmem [shape: bf16[24,216], index: 7, kind: input, shape index: {}]   ;;  %s3977_s8 = inlined_call_operand.vmem [shape: f32[24,1], index: 8, kind: input, shape index: {}]   ;;  %s3978_s9 = inlined_call_operand.vmem [shape: bf16[24,216], index: 9, kind: input, shape index: {}]   ;;  %s3979_s10 = inlined_call_operand.vmem [shape: f32[24,1], index: 10, kind: input, shape index: {}]   ;;  %s3980_s11 = inlined_call_operand.vmem [shape: bf16[64,24], index: 11, kind: input, shape index: {}]   ;;  %s3981_s12 = inlined_call_operand.vmem [shape: bf16[64,2], index: 12, kind: input, shape index: {}]   ;;  %s3982_s13 = inlined_call_operand.vmem [shape: f32[64,1], index: 13, kind: input, shape index: {}]   ;;  %s3983_s14 = inlined_call_operand.vmem [shape: bf16[64,64], index: 14, kind: input, shape index: {}]   ;;  %s3984_s15 = inlined_call_operand.vmem [shape: f32[64,1], index: 15, kind: input, shape index: {}]   ;;  %s3985_s16 = inlined_call_operand.vmem [shape: bf16[4,64], index: 16, kind: input, shape index: {}]   ;;  %s3986_s17 = inlined_call_operand.vmem [shape: f32[4,1], index: 17, kind: input, shape index: {}]   ;;  %s3987_s18 = inlined_call_operand.vmem [shape: bf16[4,64], index: 18, kind: input, shape index: {}]   ;;  %s3988_s19 = inlined_call_operand.vmem [shape: f32[4,1], index: 19, kind: input, shape index: {}]   ;;  %s3989_s20 = inlined_call_operand.vmem [shape: f32[2,4,1], index: 20, kind: output, shape index: {}]  }
   0x1   :  { %4011 = sst [smem:[#allocation2_spill]] %s3969_s0 }
   0x2   :  { %4012 = sst [smem:[#allocation3_spill]] %s3970_s1  ;;  %s3445_s1 = smov 0  }
   0x3   :  { %4013 = sst [smem:[#allocation4_spill]] %s3971_s2 }
   0x4   :  { %4014 = sst [smem:[#allocation5_spill]] %s3972_s3 }
   0x5   :  { %4015 = sst [smem:[#allocation6_spill]] %s3973_s4 }
   0x6 LB: > { %s2615_s22 = sadd.s32 4294967295, %s3322_s1   ;;  %p2619_p0 = scmp.ge.s32.totalorder %s3322_s1, 1  ;;  %s3322_s1 = sphi %s3445_s1, %s30_s1  }
   0x7   : > { %p579_p1 = scmp.lt.s32.totalorder %s3322_s1, 3 }
   0x9   : > { %p580_p2 = pnand %p2619_p0, %p579_p1 }
   0xa   : > { %p643_p3 = scmp.lt.s32.totalorder (!%p580_p2), %s2615_s22, 1  ;;  %s4016_s25 = sld [smem:[#allocation2_spill]] (!%p580_p2)  ;;  %v3330_v3 = vmov (!%p580_p2), 0   ;;  %vm668_vm0 = vcmask (!%p580_p2), 1039360   ;;  %vm688_vm1 = vcmask (!%p580_p2), 916480   ;;  %vm678_vm2 = vcmask (!%p580_p2), 1031168  }
   0xb   : > { %583 = sbr.rel (%p580_p2) target bundleno = 2591 (0xa1f), region = 100  ;;  %s3324_s26 = smov (!%p580_p2), 127   ;;  %829 = vmatprep.mubr.bf16.mxu0 (!%p580_p2), %v3330_v3  ;;  %2844 = vset.pattern.permute.xlu0 (!%p580_p2), %v3330_v3  ;;  %vm698_vm3 = vcmask (!%p580_p2), 908288   ;;  %vm708_vm4 = vcmask (!%p580_p2), 900096   ;;  %vm718_vm5 = vcmask (!%p580_p2), 785408   ;;  %vm728_vm6 = vcmask (!%p580_p2), 777216  }
   0xc   : > { %s3325_s27 = smov (!%p580_p2), 112   ;;  %s3996_s28 = smov (!%p580_p2), 126   ;;  %2845 = vset.pattern.permute.xlu1 (!%p580_p2), %v3330_v3  ;;  %vm738_vm7 = vcmask (!%p580_p2), 769024   ;;  %vm790_vm8 = vcmask (!%p580_p2), 1043456   ;;  %vm783_vm9 = vcmask (!%p580_p2), 588800   ;;  %vm1134_vm10 = vcmask (!%p580_p2), 719872  }
   0xd   : > { %s3998_s4 = smov (!%p580_p2), 111   ;;  %s3994_s29 = smov (!%p580_p2), 110   ;;  %vm1348_vm11 = vcmask (!%p580_p2), 1014784   ;;  %vm1430_vm12 = vcmask (!%p580_p2), 752640   ;;  %vm1458_vm13 = vcmask (!%p580_p2), 523264   ;;  %vm1486_vm14 = vcmask (!%p580_p2), 506880  }
   0xe   : > { %s3992_s30 = smov (!%p580_p2), 96   ;;  %s3331_s0 = smov (!%p580_p2), 95   ;;  %vm1514_vm15 = vcmask (!%p580_p2), 490496  }
   0xf   : > { %s4004_s21 = smov (!%p580_p2), 94   ;;  %s4017_s2 = sld [smem:[#allocation6_spill]] (!%p580_p2) }
  0x10   : > { %s4024_s24 = smov (!%p580_p2), 94  }
  0x12   : > { %s4031_s22 = smov (!%p643_p3, %s2615_s22), 1 }
  0x13   : > { %s2678_s23 = sshll.u32 %s4031_s22, 4 }
  0x14   : > { %s647_s3 = scalar_lea.vmem %s4016_s25, %s2678_s23  ;;  %s4018_s23 = sld [smem:[#allocation5_spill]] }
  0x15   : > { %v660_v0 = vld [vmem:[%s647_s3] sm:$0xff]  ;;  %v661_v1 = vld [vmem:[%s647_s3 + $0x8] sm:$0xff]  ;;  %v759_v6 = vld [vmem:[%s4017_s2 + $0x10] sm:$0xff]  ;;  %s4019_s3 = smov 110   ;;  %s4025_s25 = smov 92  }
  0x16   : > { %v2804_v2 = vpack.i.bf16 %v661_v1, %v660_v0  ;;  %v757_v4 = vld [vmem:[%s4017_s2] sm:$0xff]  ;;  %v758_v5 = vld [vmem:[%s4017_s2 + $0x8] sm:$0xff] }
  0x18   : > { %2805 = vrot.lane.b32.xlu0 %v2804_v2, %s3324_s26  ;;  %2815 = vrot.lane.b32.xlu1 %v2804_v2, %s3325_s27 }
  0x1a   : > { %v3251_v58 = vld [vmem:[%s4018_s23] sm:$0xff]   ;;  %v3252_v59 = vld [vmem:[%s4018_s23 + $0x8] ss:$0 sps:$4 sm:$0xff]  }
  0x1c   : > { %2810 = vrot.lane.b32.xlu0 %v2804_v2, %s3996_s28  ;;  %2820 = vrot.lane.b32.xlu1 %v2804_v2, %s3998_s4 }
  0x20   : > { %2825 = vrot.lane.b32.xlu0 %v2804_v2, %s3994_s29  ;;  %2830 = vrot.lane.b32.xlu1 %v2804_v2, %s3992_s30  ;;  %s4020_s29 = smov 96   ;;  %s4000_s30 = smov 64  }
  0x24   : > { %2835 = vrot.lane.b32.xlu0 %v2804_v2, %s3331_s0  ;;  %2840 = vrot.lane.b32.xlu1 %v2804_v2, %s4004_s21 }
  0x28   : > { %762 = vperm.xlu0 %2844, %v757_v4   ;;  %767 = vperm.xlu1 %2845, %v758_v5  }
  0x2c   : > { %772 = vperm.xlu1 %2845, %v759_v6  }
  0x8a   : > { %v2806_v7 = vpop.permute.xlu0 %2805  ;;  %v2816_v8 = vpop.permute.xlu1 %2815 }
  0x8b   : > { %v2808_v9 = vunpack.i.h.bf16 %v2806_v7  ;;  %v2807_v10 = vunpack.i.l.bf16 %v2806_v7  ;;  %v2818_v11 = vunpack.i.h.bf16 %v2816_v8  ;;  %v2817_v12 = vunpack.i.l.bf16 %v2816_v8 }
  0x8d   : > { %v673_v13 = vsel %vm668_vm0, %v2808_v9, %v2807_v10  ;;  %v669_v14 = vsel %vm668_vm0, %v2807_v10, %v2808_v9  ;;  %v693_v19 = vsel %vm688_vm1, %v2818_v11, %v2817_v12  ;;  %v689_v20 = vsel %vm688_vm1, %v2817_v12, %v2818_v11 }
  0x8e   : > { %v2811_v15 = vpop.permute.xlu0 %2810  ;;  %v745_v16 = vpack.c.bf16 %v673_v13, %v661_v1  ;;  %v744_v17 = vpack.c.bf16 %v669_v14, %v660_v0  ;;  %v2821_v18 = vpop.permute.xlu1 %2820 }
  0x8f   : > { %v2813_v21 = vunpack.i.h.bf16 %v2811_v15  ;;  %v2812_v22 = vunpack.i.l.bf16 %v2811_v15  ;;  %v2823_v23 = vunpack.i.h.bf16 %v2821_v18  ;;  %v2822_v24 = vunpack.i.l.bf16 %v2821_v18 }
  0x90   : > { %797 = vmatprep.subr.bf16.mxu0 %v745_v16 }
  0x91   : > { %798 = vmatpush1.bf16.msra.mxu0 %v744_v17  ;;  %v683_v25 = vsel %vm678_vm2, %v2813_v21, %v2812_v22  ;;  %v679_v26 = vsel %vm678_vm2, %v2812_v22, %v2813_v21  ;;  %v703_v31 = vsel %vm698_vm3, %v2823_v23, %v2822_v24  ;;  %v699_v32 = vsel %vm698_vm3, %v2822_v24, %v2823_v23  ;;  %v1101_v21 = vld [vmem:[%s3975_s6] sm:$0xff]  ;;  %v1103_v22 = vld [vmem:[%s3975_s6 + $0x10] sm:$0xff] }
  0x92   : > { %v2826_v27 = vpop.permute.xlu0 %2825  ;;  %v747_v28 = vpack.c.bf16 %v693_v19, %v683_v25  ;;  %v746_v29 = vpack.c.bf16 %v689_v20, %v679_v26  ;;  %v2831_v30 = vpop.permute.xlu1 %2830  ;;  %v3255_v19 = vld [vmem:[%s3974_s5 + $0x4] ss:$8 sps:$4 sm:$0xff]  }
  0x93   : > { %v2828_v33 = vunpack.i.h.bf16 %v2826_v27  ;;  %v2827_v34 = vunpack.i.l.bf16 %v2826_v27  ;;  %v2833_v35 = vunpack.i.h.bf16 %v2831_v30  ;;  %v2832_v36 = vunpack.i.l.bf16 %v2831_v30  ;;  %v1102_v20 = vld [vmem:[%s3975_s6 + $0x8] sm:$0xff]  ;;  %2634 = vmatprep.mubr.msk.bf16.mxu1 %vm1134_vm10, %v3255_v19 }
  0x94   : > { %799 = vmatprep.subr.bf16.mxu0 %v747_v28 }
  0x95   : > { %800 = vmatpush1.bf16.msra.mxu0 %v746_v29  ;;  %v713_v37 = vsel %vm708_vm4, %v2828_v33, %v2827_v34  ;;  %v709_v38 = vsel %vm708_vm4, %v2827_v34, %v2828_v33  ;;  %v723_v43 = vsel %vm718_vm5, %v2833_v35, %v2832_v36  ;;  %v719_v44 = vsel %vm718_vm5, %v2832_v36, %v2833_v35 }
  0x96   : > { %v2836_v39 = vpop.permute.xlu0 %2835  ;;  %v749_v40 = vpack.c.bf16 %v713_v37, %v703_v31  ;;  %v748_v41 = vpack.c.bf16 %v709_v38, %v699_v32  ;;  %v2841_v42 = vpop.permute.xlu1 %2840 }
  0x97   : > { %v2838_v45 = vunpack.i.h.bf16 %v2836_v39  ;;  %v2837_v46 = vunpack.i.l.bf16 %v2836_v39  ;;  %v2843_v47 = vunpack.i.h.bf16 %v2841_v42  ;;  %v2842_v48 = vunpack.i.l.bf16 %v2841_v42 }
  0x98   : > { %801 = vmatprep.subr.bf16.mxu0 %v749_v40 }
  0x99   : > { %802 = vmatpush1.bf16.msra.mxu0 %v748_v41  ;;  %v733_v49 = vsel %vm728_vm6, %v2838_v45, %v2837_v46  ;;  %v729_v50 = vsel %vm728_vm6, %v2837_v46, %v2838_v45  ;;  %v743_v51 = vsel %vm738_vm7, %v2843_v47, %v2842_v48  ;;  %v739_v52 = vsel %vm738_vm7, %v2842_v48, %v2843_v47 }
  0x9a   : > { %v751_v53 = vpack.c.bf16 %v733_v49, %v723_v43  ;;  %v750_v54 = vpack.c.bf16 %v729_v50, %v719_v44  ;;  %v753_v55 = vpack.c.bf16 %v743_v51, %v743_v51  ;;  %v752_v56 = vpack.c.bf16 %v739_v52, %v739_v52 }
  0x9c   : > { %803 = vmatprep.subr.bf16.mxu0 %v751_v53  ;;  %v792_v57 = vsel %vm790_vm8, %v752_v56, 0 }
  0x9d   : > { %804 = vmatpush1.bf16.msra.mxu0 %v750_v54 }
  0x9e   : > { %2626 = vmatprep.subr.msk.bf16.mxu0 %vm790_vm8, %v753_v55 }
  0xa1   : > { %806 = vmatpush1.bf16.msra.mxu0 %v792_v57 }
  0xa4   : > { %2627 = vmatmul.mubr.msk.bf16.vlgmr.msra.gmra.mrb[0].mxu0 %vm783_vm9, %v3251_v58 }
  0xa5   : > { %839 = vmatprep.mubr.bf16.mxu0 %v3330_v3 }
  0xa7   : > { %v763_v60 = vpop.permute.xlu0 %762  ;;  %v768_v62 = vpop.permute.xlu1 %767 }
  0xab   : > { %v773_v11 = vpop.permute.xlu1 %772 }
  0xac   : > { %2628 = vmatmul.mubr.msk.bf16.gmra.mrb[4].mxu0 %vm783_vm9, %v3252_v59 }
 0x177   : > { %v831_v61 = vpop.f32.mrb[0].mxu0 }
 0x178   : > { %v832_v63 = vadd.f32 %v831_v61, %v763_v60  ;;  %v833_v0 = vpop.f32.mrb[1].mxu0 }
 0x179   : > { %v834_v1 = vadd.f32 %v833_v0, %v763_v60  ;;  %v835_v2 = vpop.f32.mrb[2].mxu0 }
 0x17a   : > { %v836_v4 = vadd.f32 %v835_v2, %v768_v62  ;;  %v837_v5 = vpop.f32.mrb[3].mxu0 }
 0x17b   : > { %v838_v6 = vadd.f32 %v837_v5, %v768_v62  ;;  %v2846_v7 = vpack.i.bf16 %v834_v1, %v832_v63 }
 0x17c   : > { %v1070_v8 = vpack.c.bf16 %v836_v4, %v832_v63 }
 0x17d   : > { %2847 = vrot.lane.b32.xlu0 %v2846_v7, %s3324_s26  ;;  %v2851_v9 = vpack.i.bf16 %v838_v6, %v836_v4  ;;  %v1071_v10 = vpack.c.bf16 %v838_v6, %v834_v1 }
 0x17f   : > { %v841_v12 = vpop.f32.mrb[4].mxu0  ;;  %2852 = vrot.lane.b32.xlu1 %v2851_v9, %s3324_s26  ;;  %1147 = vmatprep.subr.bf16.mxu1 %v1071_v10 }
 0x180   : > { %v842_v13 = vadd.f32 %v841_v12, %v773_v11  ;;  %v843_v14 = vpop.f32.mrb[5].mxu0  ;;  %1148 = vmatpush1.bf16.msra.mxu1 %v1070_v8 }
 0x181   : > { %v844_v15 = vadd.f32 %v843_v14, %v773_v11  ;;  %v845_v16 = vpop.f32.mrb[6].mxu0 }
 0x182   : > { %v846_v17 = vpop.f32.mrb[7].mxu0 }
 0x183   : > { %2857 = vrot.lane.b32.xlu1 %v2846_v7, %s3996_s28  ;;  %v2861_v18 = vpack.i.bf16 %v844_v15, %v842_v13 }
 0x185   : > { %2862 = vrot.lane.b32.xlu0 %v2861_v18, %s3324_s26 }
 0x187   : > { %2877 = vrot.lane.b32.xlu1 %v2861_v18, %s3996_s28 }
 0x189   : > { %2867 = vrot.lane.b32.xlu0 %v2851_v9, %s3996_s28  ;;  %s4006_s28 = smov 62  }
 0x18b   : > { %2882 = vrot.lane.b32.xlu1 %v2851_v9, %s3325_s27 }
 0x18d   : > { %2872 = vrot.lane.b32.xlu0 %v2846_v7, %s3325_s27 }
 0x18f   : > { %2887 = vrot.lane.b32.xlu1 %v2846_v7, %s3998_s4 }
 0x191   : > { %2892 = vrot.lane.b32.xlu0 %v2861_v18, %s3325_s27 }
 0x193   : > { %2907 = vrot.lane.b32.xlu1 %v2861_v18, %s3998_s4 }
 0x195   : > { %2897 = vrot.lane.b32.xlu0 %v2851_v9, %s3998_s4  ;;  %s3337_s4 = smov 60  }
 0x197   : > { %2912 = vrot.lane.b32.xlu1 %v2851_v9, %s4019_s3 }
 0x199   : > { %2902 = vrot.lane.b32.xlu0 %v2846_v7, %s4019_s3 }
 0x19b   : > { %2917 = vrot.lane.b32.xlu1 %v2846_v7, %s4020_s29 }
 0x19d   : > { %2922 = vrot.lane.b32.xlu0 %v2861_v18, %s4019_s3  ;;  %s4021_s3 = smov 111  }
 0x19f   : > { %2937 = vrot.lane.b32.xlu1 %v2861_v18, %s4020_s29 }
 0x1a1   : > { %2927 = vrot.lane.b32.xlu0 %v2851_v9, %s4020_s29 }
 0x1a3   : > { %2942 = vrot.lane.b32.xlu1 %v2851_v9, %s3331_s0 }
 0x1a5   : > { %2932 = vrot.lane.b32.xlu0 %v2846_v7, %s3331_s0 }
 0x1a7   : > { %2947 = vrot.lane.b32.xlu1 %v2846_v7, %s4004_s21 }
 0x1a9   : > { %2952 = vrot.lane.b32.xlu0 %v2861_v18, %s3331_s0  ;;  %s4002_s0 = smov 92  }
 0x1ab   : > { %2962 = vrot.lane.b32.xlu1 %v2861_v18, %s4004_s21 }
 0x1ad   : > { %2957 = vrot.lane.b32.xlu0 %v2851_v9, %s4004_s21 }
 0x1af   : > { %1111 = vperm.xlu1 %2845, %v1102_v20  }
 0x1b1   : > { %1106 = vperm.xlu0 %2844, %v1101_v21  }
 0x1b5   : > { %1116 = vperm.xlu0 %2844, %v1103_v22  }
 0x1ef   : > { %v2848_v23 = vpop.permute.xlu0 %2847 }
 0x1f0   : > { %v2850_v24 = vunpack.i.h.bf16 %v2848_v23  ;;  %v2849_v25 = vunpack.i.l.bf16 %v2848_v23 }
 0x1f1   : > { %v2853_v26 = vpop.permute.xlu1 %2852 }
 0x1f2   : > { %v878_v27 = vsel %vm668_vm0, %v2850_v24, %v2849_v25  ;;  %v866_v28 = vsel %vm668_vm0, %v2849_v25, %v2850_v24  ;;  %v2855_v32 = vunpack.i.h.bf16 %v2853_v26  ;;  %v2854_v33 = vunpack.i.l.bf16 %v2853_v26 }
 0x1f3   : > { %v1073_v29 = vpack.c.bf16 %v878_v27, %v844_v15  ;;  %v1072_v30 = vpack.c.bf16 %v866_v28, %v842_v13 }
 0x1f4   : > { %v879_v40 = vsel %vm668_vm0, %v2855_v32, %v2854_v33  ;;  %v867_v42 = vsel %vm668_vm0, %v2854_v33, %v2855_v32 }
 0x1f5   : > { %v2858_v31 = vpop.permute.xlu1 %2857  ;;  %1149 = vmatprep.subr.bf16.mxu1 %v1073_v29 }
 0x1f6   : > { %1150 = vmatpush1.bf16.msra.mxu1 %v1072_v30  ;;  %v2860_v37 = vunpack.i.h.bf16 %v2858_v31  ;;  %v2859_v38 = vunpack.i.l.bf16 %v2858_v31 }
 0x1f7   : > { %v2863_v34 = vpop.permute.xlu0 %2862 }
 0x1f8   : > { %v2865_v35 = vunpack.i.h.bf16 %v2863_v34  ;;  %v2864_v36 = vunpack.i.l.bf16 %v2863_v34  ;;  %v905_v50 = vsel %vm678_vm2, %v2860_v37, %v2859_v38  ;;  %v893_v51 = vsel %vm678_vm2, %v2859_v38, %v2860_v37 }
 0x1f9   : > { %v2878_v39 = vpop.permute.xlu1 %2877 }
 0x1fa   : > { %v880_v41 = vsel %vm668_vm0, %v2865_v35, %v2864_v36  ;;  %v868_v43 = vsel %vm668_vm0, %v2864_v36, %v2865_v35  ;;  %v2880_v52 = vunpack.i.h.bf16 %v2878_v39  ;;  %v2879_v53 = vunpack.i.l.bf16 %v2878_v39 }
 0x1fb   : > { %v2868_v44 = vpop.permute.xlu0 %2867  ;;  %v1075_v45 = vpack.c.bf16 %v880_v41, %v879_v40  ;;  %v1074_v46 = vpack.c.bf16 %v868_v43, %v867_v42 }
 0x1fc   : > { %v2870_v47 = vunpack.i.h.bf16 %v2868_v44  ;;  %v2869_v48 = vunpack.i.l.bf16 %v2868_v44  ;;  %v907_v0 = vsel %vm678_vm2, %v2880_v52, %v2879_v53  ;;  %v895_v2 = vsel %vm678_vm2, %v2879_v53, %v2880_v52 }
 0x1fd   : > { %v2883_v49 = vpop.permute.xlu1 %2882  ;;  %1151 = vmatprep.subr.bf16.mxu1 %v1075_v45 }
 0x1fe   : > { %1152 = vmatpush1.bf16.msra.mxu1 %v1074_v46  ;;  %v906_v54 = vsel %vm678_vm2, %v2870_v47, %v2869_v48  ;;  %v894_v55 = vsel %vm678_vm2, %v2869_v48, %v2870_v47  ;;  %v2885_v61 = vunpack.i.h.bf16 %v2883_v49  ;;  %v2884_v62 = vunpack.i.l.bf16 %v2883_v49 }
 0x1ff   : > { %v2873_v56 = vpop.permute.xlu0 %2872  ;;  %v1077_v57 = vpack.c.bf16 %v906_v54, %v905_v50  ;;  %v1076_v58 = vpack.c.bf16 %v894_v55, %v893_v51 }
 0x200   : > { %v2875_v59 = vunpack.i.h.bf16 %v2873_v56  ;;  %v2874_v60 = vunpack.i.l.bf16 %v2873_v56  ;;  %v933_v11 = vsel %vm688_vm1, %v2885_v61, %v2884_v62  ;;  %v921_v12 = vsel %vm688_vm1, %v2884_v62, %v2885_v61 }
 0x201   : > { %v2888_v63 = vpop.permute.xlu1 %2887  ;;  %1153 = vmatprep.subr.bf16.mxu1 %v1077_v57 }
 0x202   : > { %1154 = vmatpush1.bf16.msra.mxu1 %v1076_v58  ;;  %v932_v1 = vsel %vm688_vm1, %v2875_v59, %v2874_v60  ;;  %v920_v4 = vsel %vm688_vm1, %v2874_v60, %v2875_v59  ;;  %v2890_v13 = vunpack.i.h.bf16 %v2888_v63  ;;  %v2889_v14 = vunpack.i.l.bf16 %v2888_v63 }
 0x203   : > { %v2893_v5 = vpop.permute.xlu0 %2892  ;;  %v1079_v6 = vpack.c.bf16 %v932_v1, %v907_v0  ;;  %v1078_v7 = vpack.c.bf16 %v920_v4, %v895_v2 }
 0x204   : > { %v2895_v8 = vunpack.i.h.bf16 %v2893_v5  ;;  %v2894_v9 = vunpack.i.l.bf16 %v2893_v5  ;;  %v959_v25 = vsel %vm698_vm3, %v2890_v13, %v2889_v14  ;;  %v947_v27 = vsel %vm698_vm3, %v2889_v14, %v2890_v13 }
 0x205   : > { %v2908_v10 = vpop.permute.xlu1 %2907  ;;  %1155 = vmatprep.subr.bf16.mxu1 %v1079_v6 }
 0x206   : > { %1156 = vmatpush1.bf16.msra.mxu1 %v1078_v7  ;;  %v934_v15 = vsel %vm688_vm1, %v2895_v8, %v2894_v9  ;;  %v922_v16 = vsel %vm688_vm1, %v2894_v9, %v2895_v8  ;;  %v2910_v22 = vunpack.i.h.bf16 %v2908_v10  ;;  %v2909_v23 = vunpack.i.l.bf16 %v2908_v10 }
 0x207   : > { %v2898_v17 = vpop.permute.xlu0 %2897  ;;  %v1081_v18 = vpack.c.bf16 %v934_v15, %v933_v11  ;;  %v1080_v19 = vpack.c.bf16 %v922_v16, %v921_v12 }
 0x208   : > { %v2900_v20 = vunpack.i.h.bf16 %v2898_v17  ;;  %v2899_v21 = vunpack.i.l.bf16 %v2898_v17  ;;  %v961_v35 = vsel %vm698_vm3, %v2910_v22, %v2909_v23  ;;  %v949_v36 = vsel %vm698_vm3, %v2909_v23, %v2910_v22 }
 0x209   : > { %v2913_v24 = vpop.permute.xlu1 %2912  ;;  %1157 = vmatprep.subr.bf16.mxu1 %v1081_v18 }
 0x20a   : > { %1158 = vmatpush1.bf16.msra.mxu1 %v1080_v19  ;;  %v960_v26 = vsel %vm698_vm3, %v2900_v20, %v2899_v21  ;;  %v948_v28 = vsel %vm698_vm3, %v2899_v21, %v2900_v20  ;;  %v2915_v37 = vunpack.i.h.bf16 %v2913_v24  ;;  %v2914_v38 = vunpack.i.l.bf16 %v2913_v24 }
 0x20b   : > { %v2903_v29 = vpop.permute.xlu0 %2902  ;;  %v1083_v30 = vpack.c.bf16 %v960_v26, %v959_v25  ;;  %v1082_v31 = vpack.c.bf16 %v948_v28, %v947_v27 }
 0x20c   : > { %v2905_v32 = vunpack.i.h.bf16 %v2903_v29  ;;  %v2904_v33 = vunpack.i.l.bf16 %v2903_v29  ;;  %v987_v49 = vsel %vm708_vm4, %v2915_v37, %v2914_v38  ;;  %v975_v51 = vsel %vm708_vm4, %v2914_v38, %v2915_v37 }
 0x20d   : > { %v2918_v34 = vpop.permute.xlu1 %2917  ;;  %1159 = vmatprep.subr.bf16.mxu1 %v1083_v30 }
 0x20e   : > { %1160 = vmatpush1.bf16.msra.mxu1 %v1082_v31  ;;  %v986_v39 = vsel %vm708_vm4, %v2905_v32, %v2904_v33  ;;  %v974_v40 = vsel %vm708_vm4, %v2904_v33, %v2905_v32  ;;  %v2920_v46 = vunpack.i.h.bf16 %v2918_v34  ;;  %v2919_v47 = vunpack.i.l.bf16 %v2918_v34 }
 0x20f   : > { %v2923_v41 = vpop.permute.xlu0 %2922  ;;  %v1085_v42 = vpack.c.bf16 %v986_v39, %v961_v35  ;;  %v1084_v43 = vpack.c.bf16 %v974_v40, %v949_v36 }
 0x210   : > { %v2925_v44 = vunpack.i.h.bf16 %v2923_v41  ;;  %v2924_v45 = vunpack.i.l.bf16 %v2923_v41  ;;  %v1013_v59 = vsel %vm718_vm5, %v2920_v46, %v2919_v47  ;;  %v1001_v60 = vsel %vm718_vm5, %v2919_v47, %v2920_v46 }
 0x211   : > { %v2938_v48 = vpop.permute.xlu1 %2937  ;;  %1161 = vmatprep.subr.bf16.mxu1 %v1085_v42 }
 0x212   : > { %1162 = vmatpush1.bf16.msra.mxu1 %v1084_v43  ;;  %v988_v50 = vsel %vm708_vm4, %v2925_v44, %v2924_v45  ;;  %v976_v52 = vsel %vm708_vm4, %v2924_v45, %v2925_v44  ;;  %v2940_v61 = vunpack.i.h.bf16 %v2938_v48  ;;  %v2939_v62 = vunpack.i.l.bf16 %v2938_v48  ;;  %v1100_v43 = vld [vmem:[%s3974_s5 + $0x10] sm:$0xff]  ;;  %v3253_v45 = vld [vmem:[%s3974_s5] ss:$8 sps:$4 sm:$0xff]  }
 0x213   : > { %v2928_v53 = vpop.permute.xlu0 %2927  ;;  %v1087_v54 = vpack.c.bf16 %v988_v50, %v987_v49  ;;  %v1086_v55 = vpack.c.bf16 %v976_v52, %v975_v51  ;;  %v2632_v46 = vcombine.high %v1100_v43, %v1100_v43  ;;  %v2631_v47 = vcombine.low %v1100_v43, %v1100_v43 }
 0x214   : > { %v2930_v56 = vunpack.i.h.bf16 %v2928_v53  ;;  %v2929_v57 = vunpack.i.l.bf16 %v2928_v53  ;;  %v1015_v10 = vsel %vm718_vm5, %v2940_v61, %v2939_v62  ;;  %v1003_v12 = vsel %vm718_vm5, %v2939_v62, %v2940_v61 }
 0x215   : > { %v2943_v58 = vpop.permute.xlu1 %2942  ;;  %1163 = vmatprep.subr.bf16.mxu1 %v1087_v54 }
 0x216   : > { %1164 = vmatpush1.bf16.msra.mxu1 %v1086_v55  ;;  %v1014_v63 = vsel %vm718_vm5, %v2930_v56, %v2929_v57  ;;  %v1002_v0 = vsel %vm718_vm5, %v2929_v57, %v2930_v56  ;;  %v2945_v7 = vunpack.i.h.bf16 %v2943_v58  ;;  %v2944_v8 = vunpack.i.l.bf16 %v2943_v58 }
 0x217   : > { %v2933_v1 = vpop.permute.xlu0 %2932  ;;  %v1089_v2 = vpack.c.bf16 %v1014_v63, %v1013_v59  ;;  %v1088_v4 = vpack.c.bf16 %v1002_v0, %v1001_v60 }
 0x218   : > { %v2935_v5 = vunpack.i.h.bf16 %v2933_v1  ;;  %v2934_v6 = vunpack.i.l.bf16 %v2933_v1  ;;  %v1041_v22 = vsel %vm728_vm6, %v2945_v7, %v2944_v8  ;;  %v1029_v23 = vsel %vm728_vm6, %v2944_v8, %v2945_v7 }
 0x219   : > { %v2948_v9 = vpop.permute.xlu1 %2947  ;;  %1165 = vmatprep.subr.bf16.mxu1 %v1089_v2 }
 0x21a   : > { %1166 = vmatpush1.bf16.msra.mxu1 %v1088_v4  ;;  %v1040_v11 = vsel %vm728_vm6, %v2935_v5, %v2934_v6  ;;  %v1028_v13 = vsel %vm728_vm6, %v2934_v6, %v2935_v5  ;;  %v2950_v19 = vunpack.i.h.bf16 %v2948_v9  ;;  %v2949_v20 = vunpack.i.l.bf16 %v2948_v9 }
 0x21b   : > { %v2953_v14 = vpop.permute.xlu0 %2952  ;;  %v1091_v15 = vpack.c.bf16 %v1040_v11, %v1015_v10  ;;  %v1090_v16 = vpack.c.bf16 %v1028_v13, %v1003_v12 }
 0x21c   : > { %v2955_v17 = vunpack.i.h.bf16 %v2953_v14  ;;  %v2954_v18 = vunpack.i.l.bf16 %v2953_v14  ;;  %v1067_v33 = vsel %vm738_vm7, %v2950_v19, %v2949_v20  ;;  %v1055_v34 = vsel %vm738_vm7, %v2949_v20, %v2950_v19 }
 0x21d   : > { %v2963_v21 = vpop.permute.xlu1 %2962  ;;  %1167 = vmatprep.subr.bf16.mxu1 %v1091_v15 }
 0x21e   : > { %v2965_v24 = vunpack.i.h.bf16 %v2963_v21  ;;  %v2964_v25 = vunpack.i.l.bf16 %v2963_v21  ;;  %1168 = vmatpush1.bf16.msra.mxu1 %v1090_v16  ;;  %v1042_v26 = vsel %vm728_vm6, %v2955_v17, %v2954_v18  ;;  %v1030_v27 = vsel %vm728_vm6, %v2954_v18, %v2955_v17 }
 0x21f   : > { %v2958_v28 = vpop.permute.xlu0 %2957  ;;  %v1093_v29 = vpack.c.bf16 %v1042_v26, %v1041_v22  ;;  %v1092_v30 = vpack.c.bf16 %v1030_v27, %v1029_v23  ;;  %vm2520_vm6 = vcmask 3072  }
 0x220   : > { %v2960_v31 = vunpack.i.h.bf16 %v2958_v28  ;;  %v2959_v32 = vunpack.i.l.bf16 %v2958_v28  ;;  %v1069_v35 = vsel %vm738_vm7, %v2965_v24, %v2964_v25  ;;  %v1057_v38 = vsel %vm738_vm7, %v2964_v25, %v2965_v24 }
 0x221   : > { %1169 = vmatprep.subr.bf16.mxu1 %v1093_v29  ;;  %v1097_v41 = vpack.c.bf16 %v1069_v35, %v1069_v35  ;;  %v1096_v42 = vpack.c.bf16 %v1057_v38, %v1057_v38 }
 0x222   : > { %1170 = vmatpush1.bf16.msra.mxu1 %v1092_v30  ;;  %v1068_v36 = vsel %vm738_vm7, %v2960_v31, %v2959_v32  ;;  %v1056_v37 = vsel %vm738_vm7, %v2959_v32, %v2960_v31 }
 0x223   : > { %v1095_v39 = vpack.c.bf16 %v1068_v36, %v1067_v33  ;;  %v1094_v40 = vpack.c.bf16 %v1056_v37, %v1055_v34  ;;  %v1142_v44 = vsel %vm790_vm8, %v1096_v42, 0 }
 0x225   : > { %1171 = vmatprep.subr.bf16.mxu1 %v1095_v39 }
 0x226   : > { %1172 = vmatpush1.bf16.msra.mxu1 %v1094_v40 }
 0x227   : > { %2633 = vmatprep.subr.msk.bf16.mxu1 %vm790_vm8, %v1097_v41 }
 0x22a   : > { %1174 = vmatpush1.bf16.msra.mxu1 %v1142_v44 }
 0x22d   : > { %1180 = vmatmul.mubr.bf16.vlgmr.msra.gmra.mrb[0].mxu1 %v3253_v45 }
 0x22e   : > { %2635 = vmatprep.mubr.msk.bf16.mxu1 %vm1134_vm10, %v2632_v46  ;;  %v1112_v54 = vpop.permute.xlu1 %1111 }
 0x230   : > { %v1107_v48 = vpop.permute.xlu0 %1106 }
 0x234   : > { %v1117_v59 = vpop.permute.xlu0 %1116 }
 0x235   : > { %1190 = vmatmul.mubr.bf16.gmra.mrb[4].mxu1 %v2631_v47 }
 0x300   : > { %v1181_v49 = vpop.f32.mrb[0].mxu1 }
 0x301   : > { %v1182_v50 = vadd.f32 %v1181_v49, %v1107_v48  ;;  %v1183_v51 = vpop.f32.mrb[1].mxu1 }
 0x302   : > { %v1184_v52 = vadd.f32 %v1183_v51, %v1107_v48  ;;  %v1185_v53 = vpop.f32.mrb[2].mxu1 }
 0x303   : > { %v1187_v55 = vpop.f32.mrb[3].mxu1  ;;  %v3598_v56 = vadd.f32 %v1185_v53, %v1112_v54 }
 0x304   : > { %v3600_v57 = vadd.f32 %v1187_v55, %v1112_v54  ;;  %v2971_v58 = vpack.i.bf16 %v1184_v52, %v1182_v50 }
 0x306   : > { %2972 = vrot.lane.b32.xlu0 %v2971_v58, %s3325_s27  ;;  %2967 = vrot.lane.b32.xlu1 %v2971_v58, %s3324_s26  ;;  %v2981_v61 = vpack.i.bf16 %v3600_v57, %v3598_v56 }
 0x308   : > { %v1191_v60 = vpop.f32.mrb[4].mxu1 }
 0x309   : > { %v3606_v62 = vadd.f32 %v1191_v60, %v1117_v59  ;;  %v1193_v63 = vpop.f32.mrb[5].mxu1 }
 0x30a   : > { %v3608_v0 = vadd.f32 %v1193_v63, %v1117_v59  ;;  %v1195_v1 = vpop.f32.mrb[6].mxu1  ;;  %2982 = vrot.lane.b32.xlu0 %v2981_v61, %s3324_s26  ;;  %2977 = vrot.lane.b32.xlu1 %v2971_v58, %s4021_s3 }
 0x30b   : > { %v1196_v2 = vpop.f32.mrb[7].mxu1 }
 0x30c   : > { %v2996_v4 = vpack.i.bf16 %v3608_v0, %v3606_v62 }
 0x30e   : > { %2987 = vrot.lane.b32.xlu0 %v2981_v61, %s3325_s27  ;;  %2997 = vrot.lane.b32.xlu1 %v2996_v4, %s3324_s26  ;;  %s4022_s26 = smov 126  }
 0x312   : > { %2992 = vrot.lane.b32.xlu0 %v2981_v61, %s4021_s3  ;;  %3002 = vrot.lane.b32.xlu1 %v2996_v4, %s3325_s27  ;;  %s4008_s27 = smov 124  }
 0x316   : > { %3007 = vrot.lane.b32.xlu1 %v2996_v4, %s4021_s3  ;;  %s4026_s3 = smov 64  }
 0x378   : > { %v2973_v5 = vpop.permute.xlu0 %2972  ;;  %v2968_v6 = vpop.permute.xlu1 %2967 }
 0x379   : > { %v2970_v7 = vunpack.i.h.bf16 %v2968_v6  ;;  %v2969_v8 = vunpack.i.l.bf16 %v2968_v6  ;;  %v2975_v9 = vunpack.i.h.bf16 %v2973_v5  ;;  %v2974_v10 = vunpack.i.l.bf16 %v2973_v5 }
 0x37b   : > { %v1216_v13 = vsel %vm668_vm0, %v2969_v8, %v2970_v7  ;;  %v1228_v14 = vsel %vm668_vm0, %v2970_v7, %v2969_v8  ;;  %v1249_v17 = vsel %vm688_vm1, %v2974_v10, %v2975_v9  ;;  %v1261_v18 = vsel %vm688_vm1, %v2975_v9, %v2974_v10 }
 0x37c   : > { %v2983_v11 = vpop.permute.xlu0 %2982  ;;  %v2978_v12 = vpop.permute.xlu1 %2977  ;;  %v1231_v21 = vmax.f32 %v1182_v50, %v1216_v13  ;;  %v1232_v22 = vmax.f32 %v1184_v52, %v1228_v14  ;;  %v1563_v13 = vld [vmem:[%s3977_s8 + $0x10] sm:$0xff] }
 0x37d   : > { %v2980_v15 = vunpack.i.h.bf16 %v2978_v12  ;;  %v2979_v16 = vunpack.i.l.bf16 %v2978_v12  ;;  %v2985_v27 = vunpack.i.h.bf16 %v2983_v11  ;;  %v2984_v28 = vunpack.i.l.bf16 %v2983_v11  ;;  %v1562_v11 = vld [vmem:[%s3977_s8 + $0x8] sm:$0xff]  ;;  %v1561_v12 = vld [vmem:[%s3977_s8] sm:$0xff] }
 0x37f   : > { %v1276_v19 = vsel %vm698_vm3, %v2979_v16, %v2980_v15  ;;  %v1288_v20 = vsel %vm698_vm3, %v2980_v15, %v2979_v16  ;;  %v1217_v38 = vsel %vm668_vm0, %v2984_v28, %v2985_v27  ;;  %v1229_v39 = vsel %vm668_vm0, %v2985_v27, %v2984_v28 }
 0x380   : > { %v1291_v23 = vmax.f32 %v1249_v17, %v1276_v19  ;;  %v1292_v24 = vmax.f32 %v1261_v18, %v1288_v20  ;;  %v2988_v25 = vpop.permute.xlu0 %2987  ;;  %v2998_v26 = vpop.permute.xlu1 %2997  ;;  %v1233_v50 = vmax.f32 %v3598_v56, %v1217_v38  ;;  %v1234_v51 = vmax.f32 %v3600_v57, %v1229_v39 }
 0x381   : > { %v2990_v29 = vunpack.i.h.bf16 %v2988_v25  ;;  %v2989_v30 = vunpack.i.l.bf16 %v2988_v25  ;;  %v3000_v33 = vunpack.i.h.bf16 %v2998_v26  ;;  %v2999_v34 = vunpack.i.l.bf16 %v2998_v26 }
 0x382   : > { %v1297_v31 = vmax.f32 %v1231_v21, %v1291_v23  ;;  %v1298_v32 = vmax.f32 %v1232_v22, %v1292_v24 }
 0x383   : > { %v1250_v42 = vsel %vm688_vm1, %v2989_v30, %v2990_v29  ;;  %v1262_v43 = vsel %vm688_vm1, %v2990_v29, %v2989_v30  ;;  %v1218_v44 = vsel %vm668_vm0, %v2999_v34, %v3000_v33  ;;  %v1230_v45 = vsel %vm668_vm0, %v3000_v33, %v2999_v34 }
 0x384   : > { %v2993_v35 = vpop.permute.xlu0 %2992  ;;  %v3003_v36 = vpop.permute.xlu1 %3002  ;;  %v3011_v37 = vpack.i.bf16 %v1298_v32, %v1297_v31  ;;  %v1235_v59 = vmax.f32 %v3606_v62, %v1218_v44  ;;  %v1236_v60 = vmax.f32 %v3608_v0, %v1230_v45  ;;  %v3260_v0 = vld [vmem:[%s3976_s7 + $0x4] ss:$8 sps:$4 sm:$0xff]   ;;  %vm2098_vm0 = vcmask 1040384  }
 0x385   : > { %v2995_v40 = vunpack.i.h.bf16 %v2993_v35  ;;  %v2994_v41 = vunpack.i.l.bf16 %v2993_v35  ;;  %v3005_v48 = vunpack.i.h.bf16 %v3003_v36  ;;  %v3004_v49 = vunpack.i.l.bf16 %v3003_v36  ;;  %2641 = vmatprep.mubr.msk.bf16.mxu0 %vm1134_vm10, %v3260_v0 }
 0x386   : > { %3012 = vrot.lane.b32.xlu0 %v3011_v37, %s4022_s26 }
 0x387   : > { %v1277_v46 = vsel %vm698_vm3, %v2994_v41, %v2995_v40  ;;  %v1289_v47 = vsel %vm698_vm3, %v2995_v40, %v2994_v41  ;;  %v1251_v1 = vsel %vm688_vm1, %v3004_v49, %v3005_v48  ;;  %v1263_v2 = vsel %vm688_vm1, %v3005_v48, %v3004_v49 }
 0x388   : > { %v1293_v52 = vmax.f32 %v1250_v42, %v1277_v46  ;;  %v1294_v53 = vmax.f32 %v1262_v43, %v1289_v47  ;;  %v3008_v54 = vpop.permute.xlu1 %3007  ;;  %vm2085_vm1 = vcmask 15360  }
 0x389   : > { %v3010_v55 = vunpack.i.h.bf16 %v3008_v54  ;;  %v3009_v58 = vunpack.i.l.bf16 %v3008_v54 }
 0x38a   : > { %v1299_v61 = vmax.f32 %v1233_v50, %v1293_v52  ;;  %v1300_v63 = vmax.f32 %v1234_v51, %v1294_v53 }
 0x38b   : > { %v1278_v4 = vsel %vm698_vm3, %v3009_v58, %v3010_v55  ;;  %v1290_v56 = vsel %vm698_vm3, %v3010_v55, %v3009_v58  ;;  %vm3339_vm3 = vmmov 0  }
 0x38c   : > { %v1295_v57 = vmax.f32 %v1251_v1, %v1278_v4  ;;  %v1296_v5 = vmax.f32 %v1263_v2, %v1290_v56  ;;  %v3016_v6 = vpack.i.bf16 %v1300_v63, %v1299_v61  ;;  %v1531_v7 = vpack.c.bf16 %v1300_v63, %v1298_v32 }
 0x38d   : > { %v1530_v8 = vpack.c.bf16 %v1299_v61, %v1297_v31 }
 0x38e   : > { %v1301_v9 = vmax.f32 %v1235_v59, %v1295_v57  ;;  %v1302_v10 = vmax.f32 %v1236_v60, %v1296_v5  ;;  %3017 = vrot.lane.b32.xlu1 %v3016_v6, %s4022_s26  ;;  %1606 = vmatprep.subr.bf16.mxu0 %v1531_v7 }
 0x38f   : > { %1607 = vmatpush1.bf16.msra.mxu0 %v1530_v8 }
 0x390   : > { %v3026_v62 = vpack.i.bf16 %v1302_v10, %v1301_v9 }
 0x392   : > { %3022 = vrot.lane.b32.xlu1 %v3011_v37, %s4008_s27  ;;  %3027 = vrot.lane.b32.xlu0 %v3026_v62, %s4022_s26 }
 0x396   : > { %3042 = vrot.lane.b32.xlu1 %v3026_v62, %s4008_s27  ;;  %3032 = vrot.lane.b32.xlu0 %v3016_v6, %s4008_s27  ;;  %s4029_s27 = sld [smem:[#allocation4_spill]] }
 0x39a   : > { %3047 = vrot.lane.b32.xlu1 %v3016_v6, %s4020_s29  ;;  %3037 = vrot.lane.b32.xlu0 %v3011_v37, %s4020_s29 }
 0x39e   : > { %3052 = vrot.lane.b32.xlu1 %v3011_v37, %s4004_s21  ;;  %3057 = vrot.lane.b32.xlu0 %v3026_v62, %s4020_s29 }
 0x3a2   : > { %3072 = vrot.lane.b32.xlu1 %v3026_v62, %s4004_s21  ;;  %3062 = vrot.lane.b32.xlu0 %v3016_v6, %s4004_s21  ;;  %s4027_s21 = smov 62  }
 0x3a6   : > { %3077 = vrot.lane.b32.xlu1 %v3016_v6, %s4002_s0  ;;  %3067 = vrot.lane.b32.xlu0 %v3011_v37, %s4002_s0 }
 0x3aa   : > { %3082 = vrot.lane.b32.xlu1 %v3011_v37, %s4000_s30  ;;  %3087 = vrot.lane.b32.xlu0 %v3026_v62, %s4002_s0  ;;  %s654_s0 = scalar_lea.vmem %s4029_s27, %s4031_s22 }
 0x3ae   : > { %3102 = vrot.lane.b32.xlu1 %v3026_v62, %s4000_s30  ;;  %3092 = vrot.lane.b32.xlu0 %v3016_v6, %s4000_s30  ;;  %s2622_s30 = sshll.u32 %s4031_s22, 1 }
 0x3b2   : > { %3107 = vrot.lane.b32.xlu1 %v3016_v6, %s4006_s28  ;;  %3097 = vrot.lane.b32.xlu0 %v3011_v37, %s4006_s28 }
 0x3b6   : > { %3112 = vrot.lane.b32.xlu1 %v3011_v37, %s3337_s4  ;;  %3117 = vrot.lane.b32.xlu0 %v3026_v62, %s4006_s28  ;;  %s4023_s28 = smov 124  }
 0x3ba   : > { %3127 = vrot.lane.b32.xlu1 %v3026_v62, %s3337_s4  ;;  %3122 = vrot.lane.b32.xlu0 %v3016_v6, %s3337_s4 }
 0x3be   : > { %1571 = vperm.xlu1 %2845, %v1562_v11   ;;  %1566 = vperm.xlu0 %2844, %v1561_v12  }
 0x3c2   : > { %1576 = vperm.xlu0 %2844, %v1563_v13  }
 0x3f8   : > { %v3013_v14 = vpop.permute.xlu0 %3012 }
 0x3f9   : > { %v3015_v15 = vunpack.i.h.bf16 %v3013_v14  ;;  %v3014_v16 = vunpack.i.l.bf16 %v3013_v14 }
 0x3fb   : > { %v1321_v17 = vsel %vm678_vm2, %v3014_v16, %v3015_v15  ;;  %v1333_v18 = vsel %vm678_vm2, %v3015_v15, %v3014_v16 }
 0x3fc   : > { %v1532_v19 = vpack.c.bf16 %v1321_v17, %v1301_v9  ;;  %v1533_v20 = vpack.c.bf16 %v1333_v18, %v1302_v10 }
 0x3fe   : > { %1608 = vmatprep.subr.bf16.mxu0 %v1533_v20 }
 0x3ff   : > { %1609 = vmatpush1.bf16.msra.mxu0 %v1532_v19 }
 0x400   : > { %v3018_v21 = vpop.permute.xlu1 %3017 }
 0x401   : > { %v3020_v22 = vunpack.i.h.bf16 %v3018_v21  ;;  %v3019_v23 = vunpack.i.l.bf16 %v3018_v21 }
 0x403   : > { %v1322_v28 = vsel %vm678_vm2, %v3019_v23, %v3020_v22  ;;  %v1334_v29 = vsel %vm678_vm2, %v3020_v22, %v3019_v23 }
 0x404   : > { %v3023_v24 = vpop.permute.xlu1 %3022  ;;  %v3028_v25 = vpop.permute.xlu0 %3027 }
 0x405   : > { %v3030_v26 = vunpack.i.h.bf16 %v3028_v25  ;;  %v3029_v27 = vunpack.i.l.bf16 %v3028_v25  ;;  %v3025_v30 = vunpack.i.h.bf16 %v3023_v24  ;;  %v3024_v31 = vunpack.i.l.bf16 %v3023_v24 }
 0x407   : > { %v1323_v32 = vsel %vm678_vm2, %v3029_v27, %v3030_v26  ;;  %v1335_v33 = vsel %vm678_vm2, %v3030_v26, %v3029_v27  ;;  %v1349_v42 = vsel %vm1348_vm11, %v3024_v31, %v3025_v30  ;;  %v1361_v44 = vsel %vm1348_vm11, %v3025_v30, %v3024_v31 }
 0x408   : > { %v1534_v34 = vpack.c.bf16 %v1323_v32, %v1322_v28  ;;  %v3043_v35 = vpop.permute.xlu1 %3042  ;;  %v3033_v36 = vpop.permute.xlu0 %3032  ;;  %v1535_v37 = vpack.c.bf16 %v1335_v33, %v1334_v29 }
 0x409   : > { %v3035_v38 = vunpack.i.h.bf16 %v3033_v36  ;;  %v3034_v39 = vunpack.i.l.bf16 %v3033_v36  ;;  %v3045_v40 = vunpack.i.h.bf16 %v3043_v35  ;;  %v3044_v41 = vunpack.i.l.bf16 %v3043_v35 }
 0x40a   : > { %1610 = vmatprep.subr.bf16.mxu0 %v1535_v37 }
 0x40b   : > { %v1350_v43 = vsel %vm1348_vm11, %v3034_v39, %v3035_v38  ;;  %1611 = vmatpush1.bf16.msra.mxu0 %v1534_v34  ;;  %v1362_v45 = vsel %vm1348_vm11, %v3035_v38, %v3034_v39  ;;  %v1351_v52 = vsel %vm1348_vm11, %v3044_v41, %v3045_v40  ;;  %v1363_v53 = vsel %vm1348_vm11, %v3045_v40, %v3044_v41 }
 0x40c   : > { %v1536_v46 = vpack.c.bf16 %v1350_v43, %v1349_v42  ;;  %v3048_v47 = vpop.permute.xlu1 %3047  ;;  %v3038_v48 = vpop.permute.xlu0 %3037  ;;  %v1537_v49 = vpack.c.bf16 %v1362_v45, %v1361_v44 }
 0x40d   : > { %v3040_v50 = vunpack.i.h.bf16 %v3038_v48  ;;  %v3039_v51 = vunpack.i.l.bf16 %v3038_v48  ;;  %v3050_v54 = vunpack.i.h.bf16 %v3048_v47  ;;  %v3049_v55 = vunpack.i.l.bf16 %v3048_v47 }
 0x40e   : > { %1612 = vmatprep.subr.bf16.mxu0 %v1537_v49 }
 0x40f   : > { %v1376_v58 = vsel %vm718_vm5, %v3039_v51, %v3040_v50  ;;  %1613 = vmatpush1.bf16.msra.mxu0 %v1536_v46  ;;  %v1388_v59 = vsel %vm718_vm5, %v3040_v50, %v3039_v51  ;;  %v1377_v5 = vsel %vm718_vm5, %v3049_v55, %v3050_v54  ;;  %v1389_v7 = vsel %vm718_vm5, %v3050_v54, %v3049_v55 }
 0x410   : > { %v1538_v60 = vpack.c.bf16 %v1376_v58, %v1351_v52  ;;  %v3053_v61 = vpop.permute.xlu1 %3052  ;;  %v3058_v63 = vpop.permute.xlu0 %3057  ;;  %v1539_v1 = vpack.c.bf16 %v1388_v59, %v1363_v53 }
 0x411   : > { %v3060_v2 = vunpack.i.h.bf16 %v3058_v63  ;;  %v3059_v4 = vunpack.i.l.bf16 %v3058_v63  ;;  %v3055_v56 = vunpack.i.h.bf16 %v3053_v61  ;;  %v3054_v57 = vunpack.i.l.bf16 %v3053_v61 }
 0x412   : > { %1614 = vmatprep.subr.bf16.mxu0 %v1539_v1 }
 0x413   : > { %v1378_v6 = vsel %vm718_vm5, %v3059_v4, %v3060_v2  ;;  %1615 = vmatpush1.bf16.msra.mxu0 %v1538_v60  ;;  %v1390_v8 = vsel %vm718_vm5, %v3060_v2, %v3059_v4  ;;  %v1403_v13 = vsel %vm738_vm7, %v3054_v57, %v3055_v56  ;;  %v1415_v14 = vsel %vm738_vm7, %v3055_v56, %v3054_v57 }
 0x414   : > { %v1540_v9 = vpack.c.bf16 %v1378_v6, %v1377_v5  ;;  %v3073_v10 = vpop.permute.xlu1 %3072  ;;  %v3063_v62 = vpop.permute.xlu0 %3062  ;;  %v1541_v0 = vpack.c.bf16 %v1390_v8, %v1389_v7 }
 0x415   : > { %v3065_v11 = vunpack.i.h.bf16 %v3063_v62  ;;  %v3064_v12 = vunpack.i.l.bf16 %v3063_v62  ;;  %v3075_v15 = vunpack.i.h.bf16 %v3073_v10  ;;  %v3074_v16 = vunpack.i.l.bf16 %v3073_v10 }
 0x416   : > { %1616 = vmatprep.subr.bf16.mxu0 %v1541_v0 }
 0x417   : > { %v1404_v17 = vsel %vm738_vm7, %v3064_v12, %v3065_v11  ;;  %1617 = vmatpush1.bf16.msra.mxu0 %v1540_v9  ;;  %v1416_v18 = vsel %vm738_vm7, %v3065_v11, %v3064_v12  ;;  %v1405_v27 = vsel %vm738_vm7, %v3074_v16, %v3075_v15  ;;  %v1417_v29 = vsel %vm738_vm7, %v3075_v15, %v3074_v16 }
 0x418   : > { %v1542_v19 = vpack.c.bf16 %v1404_v17, %v1403_v13  ;;  %v3078_v20 = vpop.permute.xlu1 %3077  ;;  %v3068_v21 = vpop.permute.xlu0 %3067  ;;  %v1543_v22 = vpack.c.bf16 %v1416_v18, %v1415_v14 }
 0x419   : > { %v3070_v23 = vunpack.i.h.bf16 %v3068_v21  ;;  %v3069_v24 = vunpack.i.l.bf16 %v3068_v21  ;;  %v3080_v25 = vunpack.i.h.bf16 %v3078_v20  ;;  %v3079_v26 = vunpack.i.l.bf16 %v3078_v20 }
 0x41a   : > { %1618 = vmatprep.subr.bf16.mxu0 %v1543_v22 }
 0x41b   : > { %v1431_v28 = vsel %vm1430_vm12, %v3069_v24, %v3070_v23  ;;  %1619 = vmatpush1.bf16.msra.mxu0 %v1542_v19  ;;  %v1443_v30 = vsel %vm1430_vm12, %v3070_v23, %v3069_v24  ;;  %v1432_v37 = vsel %vm1430_vm12, %v3079_v26, %v3080_v25  ;;  %v1444_v38 = vsel %vm1430_vm12, %v3080_v25, %v3079_v26 }
 0x41c   : > { %v1544_v31 = vpack.c.bf16 %v1431_v28, %v1405_v27  ;;  %v3083_v32 = vpop.permute.xlu1 %3082  ;;  %v3088_v33 = vpop.permute.xlu0 %3087  ;;  %v1545_v34 = vpack.c.bf16 %v1443_v30, %v1417_v29 }
 0x41d   : > { %v3090_v35 = vunpack.i.h.bf16 %v3088_v33  ;;  %v3089_v36 = vunpack.i.l.bf16 %v3088_v33  ;;  %v3085_v39 = vunpack.i.h.bf16 %v3083_v32  ;;  %v3084_v40 = vunpack.i.l.bf16 %v3083_v32 }
 0x41e   : > { %1620 = vmatprep.subr.bf16.mxu0 %v1545_v34  ;;  %v1560_v34 = vld [vmem:[%s3976_s7 + $0x10] sm:$0xff] }
 0x41f   : > { %v1433_v41 = vsel %vm1430_vm12, %v3089_v36, %v3090_v35  ;;  %1621 = vmatpush1.bf16.msra.mxu0 %v1544_v31  ;;  %v1445_v42 = vsel %vm1430_vm12, %v3090_v35, %v3089_v36  ;;  %v1459_v51 = vsel %vm1458_vm13, %v3084_v40, %v3085_v39  ;;  %v1471_v53 = vsel %vm1458_vm13, %v3085_v39, %v3084_v40  ;;  %v3258_v36 = vld [vmem:[%s3976_s7] ss:$8 sps:$4 sm:$0xff]  }
 0x420   : > { %v1546_v43 = vpack.c.bf16 %v1433_v41, %v1432_v37  ;;  %v3103_v44 = vpop.permute.xlu1 %3102  ;;  %v3093_v45 = vpop.permute.xlu0 %3092  ;;  %v1547_v46 = vpack.c.bf16 %v1445_v42, %v1444_v38  ;;  %v2639_v37 = vcombine.high %v1560_v34, %v1560_v34  ;;  %v2638_v38 = vcombine.low %v1560_v34, %v1560_v34 }
 0x421   : > { %v3095_v47 = vunpack.i.h.bf16 %v3093_v45  ;;  %v3094_v48 = vunpack.i.l.bf16 %v3093_v45  ;;  %v3105_v49 = vunpack.i.h.bf16 %v3103_v44  ;;  %v3104_v50 = vunpack.i.l.bf16 %v3103_v44 }
 0x422   : > { %1622 = vmatprep.subr.bf16.mxu0 %v1547_v46 }
 0x423   : > { %v1460_v52 = vsel %vm1458_vm13, %v3094_v48, %v3095_v47  ;;  %1623 = vmatpush1.bf16.msra.mxu0 %v1546_v43  ;;  %v1472_v54 = vsel %vm1458_vm13, %v3095_v47, %v3094_v48  ;;  %v1461_v1 = vsel %vm1458_vm13, %v3104_v50, %v3105_v49  ;;  %v1473_v2 = vsel %vm1458_vm13, %v3105_v49, %v3104_v50 }
 0x424   : > { %v1548_v55 = vpack.c.bf16 %v1460_v52, %v1459_v51  ;;  %v3108_v58 = vpop.permute.xlu1 %3107  ;;  %v3098_v59 = vpop.permute.xlu0 %3097  ;;  %v1549_v60 = vpack.c.bf16 %v1472_v54, %v1471_v53 }
 0x425   : > { %v3100_v61 = vunpack.i.h.bf16 %v3098_v59  ;;  %v3099_v63 = vunpack.i.l.bf16 %v3098_v59  ;;  %v3110_v4 = vunpack.i.h.bf16 %v3108_v58  ;;  %v3109_v56 = vunpack.i.l.bf16 %v3108_v58 }
 0x426   : > { %1624 = vmatprep.subr.bf16.mxu0 %v1549_v60 }
 0x427   : > { %v1487_v57 = vsel %vm1486_vm14, %v3099_v63, %v3100_v61  ;;  %1625 = vmatpush1.bf16.msra.mxu0 %v1548_v55  ;;  %v1499_v5 = vsel %vm1486_vm14, %v3100_v61, %v3099_v63  ;;  %v1488_v12 = vsel %vm1486_vm14, %v3109_v56, %v3110_v4  ;;  %v1500_v14 = vsel %vm1486_vm14, %v3110_v4, %v3109_v56  ;;  %v1910_v4 = vld [vmem:[%s3979_s10] sm:$0xff]  ;;  %v1912_v56 = vld [vmem:[%s3979_s10 + $0x10] sm:$0xff] }
 0x428   : > { %v1550_v6 = vpack.c.bf16 %v1487_v57, %v1461_v1  ;;  %v3113_v7 = vpop.permute.xlu1 %3112  ;;  %v3118_v8 = vpop.permute.xlu0 %3117  ;;  %v1551_v9 = vpack.c.bf16 %v1499_v5, %v1473_v2  ;;  %v3265_v1 = vld [vmem:[%s3978_s9 + $0x4] ss:$8 sps:$4 sm:$0xff]  }
 0x429   : > { %v3120_v10 = vunpack.i.h.bf16 %v3118_v8  ;;  %v3119_v62 = vunpack.i.l.bf16 %v3118_v8  ;;  %v3115_v0 = vunpack.i.h.bf16 %v3113_v7  ;;  %v3114_v11 = vunpack.i.l.bf16 %v3113_v7  ;;  %v1911_v2 = vld [vmem:[%s3979_s10 + $0x8] sm:$0xff]  ;;  %2648 = vmatprep.mubr.msk.bf16.mxu1 %vm1134_vm10, %v3265_v1 }
 0x42a   : > { %1626 = vmatprep.subr.bf16.mxu0 %v1551_v9 }
 0x42b   : > { %v1489_v13 = vsel %vm1486_vm14, %v3119_v62, %v3120_v10  ;;  %1627 = vmatpush1.bf16.msra.mxu0 %v1550_v6  ;;  %v1501_v15 = vsel %vm1486_vm14, %v3120_v10, %v3119_v62  ;;  %v1515_v24 = vsel %vm1514_vm15, %v3114_v11, %v3115_v0  ;;  %v1527_v25 = vsel %vm1514_vm15, %v3115_v0, %v3114_v11 }
 0x42c   : > { %v1552_v16 = vpack.c.bf16 %v1489_v13, %v1488_v12  ;;  %v3128_v17 = vpop.permute.xlu1 %3127  ;;  %v3123_v18 = vpop.permute.xlu0 %3122  ;;  %v1553_v19 = vpack.c.bf16 %v1501_v15, %v1500_v14 }
 0x42d   : > { %v3130_v20 = vunpack.i.h.bf16 %v3128_v17  ;;  %v3129_v21 = vunpack.i.l.bf16 %v3128_v17  ;;  %v3125_v22 = vunpack.i.h.bf16 %v3123_v18  ;;  %v3124_v23 = vunpack.i.l.bf16 %v3123_v18 }
 0x42e   : > { %1628 = vmatprep.subr.bf16.mxu0 %v1553_v19 }
 0x42f   : > { %v1529_v26 = vsel %vm1514_vm15, %v3130_v20, %v3129_v21  ;;  %v1516_v27 = vsel %vm1514_vm15, %v3124_v23, %v3125_v22  ;;  %1629 = vmatpush1.bf16.msra.mxu0 %v1552_v16  ;;  %v1528_v28 = vsel %vm1514_vm15, %v3125_v22, %v3124_v23  ;;  %v1517_v29 = vsel %vm1514_vm15, %v3129_v21, %v3130_v20 }
 0x430   : > { %v1554_v30 = vpack.c.bf16 %v1516_v27, %v1515_v24  ;;  %v1555_v31 = vpack.c.bf16 %v1528_v28, %v1527_v25  ;;  %v1557_v32 = vpack.c.bf16 %v1529_v26, %v1529_v26  ;;  %v1556_v33 = vpack.c.bf16 %v1517_v29, %v1517_v29 }
 0x432   : > { %1630 = vmatprep.subr.bf16.mxu0 %v1555_v31  ;;  %v1601_v35 = vsel %vm790_vm8, %v1556_v33, 0 }
 0x433   : > { %1631 = vmatpush1.bf16.msra.mxu0 %v1554_v30 }
 0x434   : > { %2640 = vmatprep.subr.msk.bf16.mxu0 %vm790_vm8, %v1557_v32 }
 0x437   : > { %1633 = vmatpush1.bf16.msra.mxu0 %v1601_v35 }
 0x43a   : > { %1639 = vmatmul.mubr.bf16.vlgmr.msra.gmra.mrb[8].mxu0 %v3258_v36 }
 0x43b   : > { %2642 = vmatprep.mubr.msk.bf16.mxu0 %vm1134_vm10, %v2639_v37 }
 0x43d   : > { %v1567_v39 = vpop.permute.xlu0 %1566  ;;  %v1572_v43 = vpop.permute.xlu1 %1571 }
 0x441   : > { %v1577_v53 = vpop.permute.xlu0 %1576 }
 0x442   : > { %1649 = vmatmul.mubr.bf16.gmra.mrb[12].mxu0 %v2638_v38 }
 0x50d   : > { %v1640_v40 = vpop.f32.mrb[8].mxu0 }
 0x50e   : > { %v1641_v41 = vadd.f32 %v1640_v40, %v1567_v39  ;;  %v1642_v42 = vpop.f32.mrb[9].mxu0 }
 0x50f   : > { %v1643_v44 = vadd.f32 %v1642_v42, %v1567_v39  ;;  %v1644_v45 = vpop.f32.mrb[10].mxu0 }
 0x510   : > { %v1645_v46 = vadd.f32 %v1644_v45, %v1572_v43  ;;  %v1646_v47 = vpop.f32.mrb[11].mxu0 }
 0x511   : > { %v1647_v48 = vadd.f32 %v1646_v47, %v1572_v43  ;;  %v3131_v49 = vpack.i.bf16 %v1643_v44, %v1641_v41 }
 0x512   : > { %v1879_v50 = vpack.c.bf16 %v1645_v46, %v1641_v41 }
 0x513   : > { %3132 = vrot.lane.b32.xlu1 %v3131_v49, %s4022_s26  ;;  %v3136_v51 = vpack.i.bf16 %v1647_v48, %v1645_v46  ;;  %v1880_v52 = vpack.c.bf16 %v1647_v48, %v1643_v44 }
 0x515   : > { %v1650_v54 = vpop.f32.mrb[12].mxu0  ;;  %3137 = vrot.lane.b32.xlu0 %v3136_v51, %s4022_s26  ;;  %1955 = vmatprep.subr.bf16.mxu1 %v1880_v52 }
 0x516   : > { %v1651_v55 = vadd.f32 %v1650_v54, %v1577_v53  ;;  %v1652_v58 = vpop.f32.mrb[13].mxu0  ;;  %1956 = vmatpush1.bf16.msra.mxu1 %v1879_v50 }
 0x517   : > { %v1653_v59 = vadd.f32 %v1652_v58, %v1577_v53  ;;  %v1654_v60 = vpop.f32.mrb[14].mxu0 }
 0x518   : > { %v1655_v61 = vpop.f32.mrb[15].mxu0 }
 0x519   : > { %3142 = vrot.lane.b32.xlu0 %v3131_v49, %s4023_s28  ;;  %v3146_v63 = vpack.i.bf16 %v1653_v59, %v1651_v55 }
 0x51b   : > { %3147 = vrot.lane.b32.xlu1 %v3146_v63, %s4022_s26 }
 0x51d   : > { %3162 = vrot.lane.b32.xlu0 %v3146_v63, %s4023_s28 }
 0x51f   : > { %3152 = vrot.lane.b32.xlu1 %v3136_v51, %s4023_s28 }
 0x521   : > { %3167 = vrot.lane.b32.xlu0 %v3136_v51, %s4020_s29 }
 0x523   : > { %3157 = vrot.lane.b32.xlu1 %v3131_v49, %s4020_s29 }
 0x525   : > { %3172 = vrot.lane.b32.xlu0 %v3131_v49, %s4024_s24 }
 0x527   : > { %3177 = vrot.lane.b32.xlu1 %v3146_v63, %s4020_s29 }
 0x529   : > { %3192 = vrot.lane.b32.xlu0 %v3146_v63, %s4024_s24 }
 0x52b   : > { %3182 = vrot.lane.b32.xlu1 %v3136_v51, %s4024_s24 }
 0x52d   : > { %3197 = vrot.lane.b32.xlu0 %v3136_v51, %s4025_s25 }
 0x52f   : > { %3187 = vrot.lane.b32.xlu1 %v3131_v49, %s4025_s25 }
 0x531   : > { %3202 = vrot.lane.b32.xlu0 %v3131_v49, %s4026_s3 }
 0x533   : > { %3207 = vrot.lane.b32.xlu1 %v3146_v63, %s4025_s25 }
 0x535   : > { %3222 = vrot.lane.b32.xlu0 %v3146_v63, %s4026_s3 }
 0x537   : > { %3212 = vrot.lane.b32.xlu1 %v3136_v51, %s4026_s3  ;;  %s4028_s3 = sld [smem:[#allocation3_spill]] }
 0x539   : > { %3227 = vrot.lane.b32.xlu0 %v3136_v51, %s4027_s21 }
 0x53b   : > { %3217 = vrot.lane.b32.xlu1 %v3131_v49, %s4027_s21 }
 0x53d   : > { %3232 = vrot.lane.b32.xlu0 %v3131_v49, %s3337_s4 }
 0x53f   : > { %3237 = vrot.lane.b32.xlu1 %v3146_v63, %s4027_s21  ;;  %s651_s21 = scalar_lea.vmem %s4028_s3, %s2622_s30 }
 0x541   : > { %3247 = vrot.lane.b32.xlu0 %v3146_v63, %s3337_s4 }
 0x543   : > { %3242 = vrot.lane.b32.xlu1 %v3136_v51, %s3337_s4 }
 0x545   : > { %1920 = vperm.xlu0 %2844, %v1911_v2  }
 0x547   : > { %1915 = vperm.xlu1 %2845, %v1910_v4  }
 0x54b   : > { %1925 = vperm.xlu1 %2845, %v1912_v56  }
 0x585   : > { %v3133_v57 = vpop.permute.xlu1 %3132 }
 0x586   : > { %v3135_v5 = vunpack.i.h.bf16 %v3133_v57  ;;  %v3134_v6 = vunpack.i.l.bf16 %v3133_v57 }
 0x587   : > { %v3138_v7 = vpop.permute.xlu0 %3137 }
 0x588   : > { %v1675_v8 = vsel %vm678_vm2, %v3134_v6, %v3135_v5  ;;  %v1687_v9 = vsel %vm678_vm2, %v3135_v5, %v3134_v6  ;;  %v3140_v11 = vunpack.i.h.bf16 %v3138_v7  ;;  %v3139_v12 = vunpack.i.l.bf16 %v3138_v7 }
 0x589   : > { %v1881_v10 = vpack.c.bf16 %v1675_v8, %v1651_v55  ;;  %v1882_v62 = vpack.c.bf16 %v1687_v9, %v1653_v59 }
 0x58a   : > { %v1676_v19 = vsel %vm678_vm2, %v3139_v12, %v3140_v11  ;;  %v1688_v21 = vsel %vm678_vm2, %v3140_v11, %v3139_v12 }
 0x58b   : > { %v3143_v0 = vpop.permute.xlu0 %3142  ;;  %1957 = vmatprep.subr.bf16.mxu1 %v1882_v62 }
 0x58c   : > { %1958 = vmatpush1.bf16.msra.mxu1 %v1881_v10  ;;  %v3145_v16 = vunpack.i.h.bf16 %v3143_v0  ;;  %v3144_v17 = vunpack.i.l.bf16 %v3143_v0 }
 0x58d   : > { %v3148_v13 = vpop.permute.xlu1 %3147 }
 0x58e   : > { %v3150_v14 = vunpack.i.h.bf16 %v3148_v13  ;;  %v3149_v15 = vunpack.i.l.bf16 %v3148_v13  ;;  %v1702_v28 = vsel %vm1348_vm11, %v3144_v17, %v3145_v16  ;;  %v1714_v30 = vsel %vm1348_vm11, %v3145_v16, %v3144_v17 }
 0x58f   : > { %v3163_v18 = vpop.permute.xlu0 %3162 }
 0x590   : > { %v1677_v20 = vsel %vm678_vm2, %v3149_v15, %v3150_v14  ;;  %v1689_v22 = vsel %vm678_vm2, %v3150_v14, %v3149_v15  ;;  %v3165_v31 = vunpack.i.h.bf16 %v3163_v18  ;;  %v3164_v32 = vunpack.i.l.bf16 %v3163_v18 }
 0x591   : > { %v1883_v23 = vpack.c.bf16 %v1677_v20, %v1676_v19  ;;  %v3153_v24 = vpop.permute.xlu1 %3152  ;;  %v1884_v25 = vpack.c.bf16 %v1689_v22, %v1688_v21  ;;  %vm2187_vm2 = vcmask 195584  }
 0x592   : > { %v3155_v26 = vunpack.i.h.bf16 %v3153_v24  ;;  %v3154_v27 = vunpack.i.l.bf16 %v3153_v24  ;;  %v1704_v43 = vsel %vm1348_vm11, %v3164_v32, %v3165_v31  ;;  %v1716_v45 = vsel %vm1348_vm11, %v3165_v31, %v3164_v32 }
 0x593   : > { %v3168_v29 = vpop.permute.xlu0 %3167  ;;  %1959 = vmatprep.subr.bf16.mxu1 %v1884_v25 }
 0x594   : > { %v1703_v33 = vsel %vm1348_vm11, %v3154_v27, %v3155_v26  ;;  %1960 = vmatpush1.bf16.msra.mxu1 %v1883_v23  ;;  %v1715_v34 = vsel %vm1348_vm11, %v3155_v26, %v3154_v27  ;;  %v3170_v40 = vunpack.i.h.bf16 %v3168_v29  ;;  %v3169_v41 = vunpack.i.l.bf16 %v3168_v29 }
 0x595   : > { %v1885_v35 = vpack.c.bf16 %v1703_v33, %v1702_v28  ;;  %v3158_v36 = vpop.permute.xlu1 %3157  ;;  %v1886_v37 = vpack.c.bf16 %v1715_v34, %v1714_v30 }
 0x596   : > { %v3160_v38 = vunpack.i.h.bf16 %v3158_v36  ;;  %v3159_v39 = vunpack.i.l.bf16 %v3158_v36  ;;  %v1730_v52 = vsel %vm718_vm5, %v3169_v41, %v3170_v40  ;;  %v1742_v54 = vsel %vm718_vm5, %v3170_v40, %v3169_v41 }
 0x597   : > { %v3173_v42 = vpop.permute.xlu0 %3172  ;;  %1961 = vmatprep.subr.bf16.mxu1 %v1886_v37 }
 0x598   : > { %v1729_v44 = vsel %vm718_vm5, %v3159_v39, %v3160_v38  ;;  %1962 = vmatpush1.bf16.msra.mxu1 %v1885_v35  ;;  %v1741_v46 = vsel %vm718_vm5, %v3160_v38, %v3159_v39  ;;  %v3175_v55 = vunpack.i.h.bf16 %v3173_v42  ;;  %v3174_v58 = vunpack.i.l.bf16 %v3173_v42 }
 0x599   : > { %v1887_v47 = vpack.c.bf16 %v1729_v44, %v1704_v43  ;;  %v3178_v48 = vpop.permute.xlu1 %3177  ;;  %v1888_v49 = vpack.c.bf16 %v1741_v46, %v1716_v45 }
 0x59a   : > { %v3180_v50 = vunpack.i.h.bf16 %v3178_v48  ;;  %v3179_v51 = vunpack.i.l.bf16 %v3178_v48  ;;  %v1756_v6 = vsel %vm738_vm7, %v3174_v58, %v3175_v55  ;;  %v1768_v8 = vsel %vm738_vm7, %v3175_v55, %v3174_v58 }
 0x59b   : > { %v3193_v53 = vpop.permute.xlu0 %3192  ;;  %1963 = vmatprep.subr.bf16.mxu1 %v1888_v49 }
 0x59c   : > { %v1731_v59 = vsel %vm718_vm5, %v3179_v51, %v3180_v50  ;;  %1964 = vmatpush1.bf16.msra.mxu1 %v1887_v47  ;;  %v1743_v60 = vsel %vm718_vm5, %v3180_v50, %v3179_v51  ;;  %v3195_v56 = vunpack.i.h.bf16 %v3193_v53  ;;  %v3194_v57 = vunpack.i.l.bf16 %v3193_v53 }
 0x59d   : > { %v1889_v61 = vpack.c.bf16 %v1731_v59, %v1730_v52  ;;  %v3183_v63 = vpop.permute.xlu1 %3182  ;;  %v1890_v1 = vpack.c.bf16 %v1743_v60, %v1742_v54 }
 0x59e   : > { %v3185_v2 = vunpack.i.h.bf16 %v3183_v63  ;;  %v3184_v4 = vunpack.i.l.bf16 %v3183_v63  ;;  %v1758_v13 = vsel %vm738_vm7, %v3194_v57, %v3195_v56  ;;  %v1770_v15 = vsel %vm738_vm7, %v3195_v56, %v3194_v57 }
 0x59f   : > { %v3198_v5 = vpop.permute.xlu0 %3197  ;;  %1965 = vmatprep.subr.bf16.mxu1 %v1890_v1 }
 0x5a0   : > { %v1757_v7 = vsel %vm738_vm7, %v3184_v4, %v3185_v2  ;;  %1966 = vmatpush1.bf16.msra.mxu1 %v1889_v61  ;;  %v1769_v9 = vsel %vm738_vm7, %v3185_v2, %v3184_v4  ;;  %v3200_v16 = vunpack.i.h.bf16 %v3198_v5  ;;  %v3199_v17 = vunpack.i.l.bf16 %v3198_v5 }
 0x5a1   : > { %v1891_v10 = vpack.c.bf16 %v1757_v7, %v1756_v6  ;;  %v3188_v62 = vpop.permute.xlu1 %3187  ;;  %v1892_v0 = vpack.c.bf16 %v1769_v9, %v1768_v8 }
 0x5a2   : > { %v3190_v11 = vunpack.i.h.bf16 %v3188_v62  ;;  %v3189_v12 = vunpack.i.l.bf16 %v3188_v62  ;;  %v1784_v28 = vsel %vm1430_vm12, %v3199_v17, %v3200_v16  ;;  %v1796_v30 = vsel %vm1430_vm12, %v3200_v16, %v3199_v17 }
 0x5a3   : > { %v3203_v14 = vpop.permute.xlu0 %3202  ;;  %1967 = vmatprep.subr.bf16.mxu1 %v1892_v0 }
 0x5a4   : > { %v1783_v18 = vsel %vm1430_vm12, %v3189_v12, %v3190_v11  ;;  %1968 = vmatpush1.bf16.msra.mxu1 %v1891_v10  ;;  %v1795_v19 = vsel %vm1430_vm12, %v3190_v11, %v3189_v12  ;;  %v3205_v25 = vunpack.i.h.bf16 %v3203_v14  ;;  %v3204_v26 = vunpack.i.l.bf16 %v3203_v14 }
 0x5a5   : > { %v1893_v20 = vpack.c.bf16 %v1783_v18, %v1758_v13  ;;  %v3208_v21 = vpop.permute.xlu1 %3207  ;;  %v1894_v22 = vpack.c.bf16 %v1795_v19, %v1770_v15 }
 0x5a6   : > { %v3210_v23 = vunpack.i.h.bf16 %v3208_v21  ;;  %v3209_v24 = vunpack.i.l.bf16 %v3208_v21  ;;  %v1810_v37 = vsel %vm1458_vm13, %v3204_v26, %v3205_v25  ;;  %v1822_v39 = vsel %vm1458_vm13, %v3205_v25, %v3204_v26 }
 0x5a7   : > { %v3223_v27 = vpop.permute.xlu0 %3222  ;;  %1969 = vmatprep.subr.bf16.mxu1 %v1894_v22  ;;  %v1909_v22 = vld [vmem:[%s3978_s9 + $0x10] sm:$0xff] }
 0x5a8   : > { %v1785_v29 = vsel %vm1430_vm12, %v3209_v24, %v3210_v23  ;;  %1970 = vmatpush1.bf16.msra.mxu1 %v1893_v20  ;;  %v1797_v31 = vsel %vm1430_vm12, %v3210_v23, %v3209_v24  ;;  %v3225_v40 = vunpack.i.h.bf16 %v3223_v27  ;;  %v3224_v41 = vunpack.i.l.bf16 %v3223_v27  ;;  %v3263_v24 = vld [vmem:[%s3978_s9] ss:$8 sps:$4 sm:$0xff]  }
 0x5a9   : > { %v1895_v32 = vpack.c.bf16 %v1785_v29, %v1784_v28  ;;  %v3213_v33 = vpop.permute.xlu1 %3212  ;;  %v1896_v34 = vpack.c.bf16 %v1797_v31, %v1796_v30  ;;  %v2646_v25 = vcombine.high %v1909_v22, %v1909_v22  ;;  %v2645_v26 = vcombine.low %v1909_v22, %v1909_v22  ;;  %v2045_v27 = vld [vmem:[%s651_s21] sm:$0x3]  ;;  %s2623_s21 = sshll.u32 %s4031_s22, 2 }
 0x5aa   : > { %v3215_v35 = vunpack.i.h.bf16 %v3213_v33  ;;  %v3214_v36 = vunpack.i.l.bf16 %v3213_v33  ;;  %v1812_v52 = vsel %vm1458_vm13, %v3224_v41, %v3225_v40  ;;  %v1824_v54 = vsel %vm1458_vm13, %v3225_v40, %v3224_v41 }
 0x5ab   : > { %v3228_v38 = vpop.permute.xlu0 %3227  ;;  %1971 = vmatprep.subr.bf16.mxu1 %v1896_v34  ;;  %v2046_v28 = vpack.c.bf16 %v2045_v27, %v2045_v27  ;;  %v3268_v34 = vld [vmem:[%s3981_s12] sm:$0xff]  }
 0x5ac   : > { %v1811_v42 = vsel %vm1458_vm13, %v3214_v36, %v3215_v35  ;;  %1972 = vmatpush1.bf16.msra.mxu1 %v1895_v32  ;;  %v1823_v43 = vsel %vm1458_vm13, %v3215_v35, %v3214_v36  ;;  %v3230_v49 = vunpack.i.h.bf16 %v3228_v38  ;;  %v3229_v50 = vunpack.i.l.bf16 %v3228_v38  ;;  %v3269_v36 = vld [vmem:[%s3981_s12 + $0x8] sm:$0xff]   ;;  %2710 = vmatprep.mubr.msk.bf16.mxu0 %vm2085_vm1, %v3268_v34  ;;  %v2272_v27 = vld [vmem:[%s3982_s13 + $0x20] sm:$0xff] }
 0x5ad   : > { %v1897_v44 = vpack.c.bf16 %v1811_v42, %v1810_v37  ;;  %v3218_v45 = vpop.permute.xlu1 %3217  ;;  %v1898_v46 = vpack.c.bf16 %v1823_v43, %v1822_v39  ;;  %2778 = vmatprep.subr.msk.bf16.mxu0 %vm2098_vm0, %v2046_v28  ;;  %v2100_v29 = vsel %vm2098_vm0, %v2046_v28, 0  ;;  %v3270_v42 = vld [vmem:[%s3981_s12 + $0x10] sm:$0xff]  }
 0x5ae   : > { %v3220_v47 = vunpack.i.h.bf16 %v3218_v45  ;;  %v3219_v48 = vunpack.i.l.bf16 %v3218_v45  ;;  %v1838_v1 = vsel %vm1486_vm14, %v3229_v50, %v3230_v49  ;;  %v1850_v57 = vsel %vm1486_vm14, %v3230_v49, %v3229_v50  ;;  %2709 = vmatpush3.bf16.msra.mxu0 %v2100_v29  ;;  %v2275_v29 = vld [vmem:[%s3982_s13 + $0x38] sm:$0xff] }
 0x5af   : > { %v3233_v51 = vpop.permute.xlu0 %3232  ;;  %1973 = vmatprep.subr.bf16.mxu1 %v1898_v46 }
 0x5b0   : > { %v1837_v53 = vsel %vm1486_vm14, %v3219_v48, %v3220_v47  ;;  %1974 = vmatpush1.bf16.msra.mxu1 %v1897_v44  ;;  %v1849_v55 = vsel %vm1486_vm14, %v3220_v47, %v3219_v48  ;;  %v3235_v2 = vunpack.i.h.bf16 %v3233_v51  ;;  %v3234_v4 = vunpack.i.l.bf16 %v3233_v51  ;;  %v3271_v44 = vld [vmem:[%s3981_s12 + $0x18] sm:$0xff]   ;;  %v3272_v48 = vld [vmem:[%s3980_s11] sm:$0xff]  }
 0x5b1   : > { %v1899_v58 = vpack.c.bf16 %v1837_v53, %v1812_v52  ;;  %v3238_v59 = vpop.permute.xlu1 %3237  ;;  %v1900_v60 = vpack.c.bf16 %v1849_v55, %v1824_v54  ;;  %2711 = vmatmul.mubr.msk.bf16.vlgmr.msra.gmra.mrb[16].mxu0 %vm2085_vm1, %v3269_v36 }
 0x5b2   : > { %v3240_v61 = vunpack.i.h.bf16 %v3238_v59  ;;  %v3239_v63 = vunpack.i.l.bf16 %v3238_v59  ;;  %v1864_v12 = vsel %vm1514_vm15, %v3234_v4, %v3235_v2  ;;  %v1876_v13 = vsel %vm1514_vm15, %v3235_v2, %v3234_v4  ;;  %2714 = vmatprep.mubr.msk.bf16.mxu0 %vm2085_vm1, %v3270_v42 }
 0x5b3   : > { %v3248_v56 = vpop.permute.xlu0 %3247  ;;  %1975 = vmatprep.subr.bf16.mxu1 %v1900_v60 }
 0x5b4   : > { %v1839_v5 = vsel %vm1486_vm14, %v3239_v63, %v3240_v61  ;;  %v3250_v6 = vunpack.i.h.bf16 %v3248_v56  ;;  %v3249_v7 = vunpack.i.l.bf16 %v3248_v56  ;;  %1976 = vmatpush1.bf16.msra.mxu1 %v1899_v58  ;;  %v1851_v8 = vsel %vm1486_vm14, %v3240_v61, %v3239_v63 }
 0x5b5   : > { %v1901_v9 = vpack.c.bf16 %v1839_v5, %v1838_v1  ;;  %v3243_v10 = vpop.permute.xlu1 %3242  ;;  %v1902_v62 = vpack.c.bf16 %v1851_v8, %v1850_v57 }
 0x5b6   : > { %v3245_v0 = vunpack.i.h.bf16 %v3243_v10  ;;  %v3244_v11 = vunpack.i.l.bf16 %v3243_v10  ;;  %v1878_v14 = vsel %vm1514_vm15, %v3250_v6, %v3249_v7  ;;  %v1866_v17 = vsel %vm1514_vm15, %v3249_v7, %v3250_v6 }
 0x5b7   : > { %1977 = vmatprep.subr.bf16.mxu1 %v1902_v62  ;;  %v1906_v20 = vpack.c.bf16 %v1878_v14, %v1878_v14  ;;  %v1905_v21 = vpack.c.bf16 %v1866_v17, %v1866_v17  ;;  %v2270_v14 = vld [vmem:[%s3982_s13 + $0x10] sm:$0xff]  ;;  %v2271_v17 = vld [vmem:[%s3982_s13 + $0x18] sm:$0xff] }
 0x5b8   : > { %v1865_v15 = vsel %vm1514_vm15, %v3244_v11, %v3245_v0  ;;  %1978 = vmatpush1.bf16.msra.mxu1 %v1901_v9  ;;  %v1877_v16 = vsel %vm1514_vm15, %v3245_v0, %v3244_v11  ;;  %v3273_v0 = vld [vmem:[%s3980_s11 + $0x8] sm:$0xff]   ;;  %v3274_v11 = vld [vmem:[%s3980_s11 + $0x10] sm:$0xff]  }
 0x5b9   : > { %v1903_v18 = vpack.c.bf16 %v1865_v15, %v1864_v12  ;;  %v1904_v19 = vpack.c.bf16 %v1877_v16, %v1876_v13  ;;  %v1950_v23 = vsel %vm790_vm8, %v1905_v21, 0  ;;  %2715 = vmatmul.mubr.msk.bf16.gmra.mrb[20].mxu0 %vm2085_vm1, %v3271_v44  ;;  %v3275_v12 = vld [vmem:[%s3980_s11 + $0x18] sm:$0xff]   ;;  %v3276_v13 = vld [vmem:[%s3983_s14] sm:$0xff]  }
 0x5ba   : > { %2722 = vmatprep.mubr.msk.bf16.mxu0 %vm2187_vm2, %v3272_v48  ;;  %v2268_v15 = vld [vmem:[%s3982_s13] sm:$0xff] }
 0x5bb   : > { %1979 = vmatprep.subr.bf16.mxu1 %v1904_v19 }
 0x5bc   : > { %1980 = vmatpush1.bf16.msra.mxu1 %v1903_v18 }
 0x5bd   : > { %2647 = vmatprep.subr.msk.bf16.mxu1 %vm790_vm8, %v1906_v20  ;;  %v2269_v20 = vld [vmem:[%s3982_s13 + $0x8] sm:$0xff] }
 0x5c0   : > { %1982 = vmatpush1.bf16.msra.mxu1 %v1950_v23 }
 0x5c3   : > { %1988 = vmatmul.mubr.bf16.vlgmr.msra.gmra.mrb[8].mxu1 %v3263_v24 }
 0x5c4   : > { %2649 = vmatprep.mubr.msk.bf16.mxu1 %vm1134_vm10, %v2646_v25  ;;  %v1921_v38 = vpop.permute.xlu0 %1920 }
 0x5c6   : > { %v1916_v30 = vpop.permute.xlu1 %1915 }
 0x5ca   : > { %v1926_v46 = vpop.permute.xlu1 %1925 }
 0x5cb   : > { %1996 = vmatmul.mubr.bf16.gmra.mrb[12].mxu1 %v2645_v26  ;;  %v2274_v26 = vld [vmem:[%s3982_s13 + $0x30] sm:$0xff] }
 0x696   : > { %v1989_v31 = vpop.f32.mrb[8].mxu1 }
 0x697   : > { %v1990_v32 = vadd.f32 %v1989_v31, %v1916_v30  ;;  %v1991_v33 = vpop.f32.mrb[9].mxu1 }
 0x698   : > { %v1992_v35 = vpop.f32.mrb[10].mxu1 }
 0x699   : > { %v1994_v37 = vpop.f32.mrb[11].mxu1  ;;  %2030 = vrot.lane.b32.xlu1 %v1990_v32, %s4024_s24  ;;  %2006 = vrot.lane.b32.xlu0 %v1990_v32, %s4022_s26  ;;  %v1993_v39 = vadd.f32 %v1992_v35, %v1921_v38 }
 0x69d   : > { %2008 = vrot.lane.b32.xlu1 %v1993_v39, %s4022_s26  ;;  %2018 = vrot.lane.b32.xlu0 %v1990_v32, %s4020_s29 }
 0x69e   : > { %v1997_v40 = vpop.f32.mrb[12].mxu1 }
 0x69f   : > { %v1999_v41 = vpop.f32.mrb[13].mxu1  ;;  %v1998_v47 = vadd.f32 %v1997_v40, %v1926_v46 }
 0x6a0   : > { %v2000_v43 = vpop.f32.mrb[14].mxu1 }
 0x6a1   : > { %2020 = vrot.lane.b32.xlu1 %v1993_v39, %s4020_s29  ;;  %2032 = vrot.lane.b32.xlu0 %v1993_v39, %s4024_s24  ;;  %v2001_v45 = vpop.f32.mrb[15].mxu1 }
 0x6a5   : > { %2022 = vrot.lane.b32.xlu1 %v1998_v47, %s4020_s29  ;;  %2010 = vrot.lane.b32.xlu0 %v1998_v47, %s4022_s26  ;;  %s658_s26 = scalar_lea.vmem %s3989_s20, %s2623_s21 }
 0x6a9   : > { %2034 = vrot.lane.b32.xlu0 %v1998_v47, %s4024_s24 }
 0x70b   : > { %v2031_v49 = vpop.permute.xlu1 %2030  ;;  %v2007_v50 = vpop.permute.xlu0 %2006 }
 0x70c   : > { %v2015_v51 = vadd.f32 %v2007_v50, %v1990_v32  ;;  %v2273_v32 = vld [vmem:[%s3982_s13 + $0x28] sm:$0xff] }
 0x70d   : > { %v3277_v50 = vld [vmem:[%s3983_s14 + $0x8] sm:$0xff]  }
 0x70f   : > { %v2009_v52 = vpop.permute.xlu1 %2008  ;;  %v2019_v53 = vpop.permute.xlu0 %2018 }
 0x710   : > { %v2027_v54 = vadd.f32 %v2019_v53, %v2015_v51  ;;  %v2016_v55 = vadd.f32 %v2009_v52, %v1993_v39  ;;  %v3278_v51 = vld [vmem:[%s3983_s14 + $0x10] sm:$0xff]   ;;  %v3279_v52 = vld [vmem:[%s3983_s14 + $0x18] sm:$0xff]   ;;  %v3338_v53 = vmov 0.0  }
 0x711   : > { %2746 = vmatprep.subr.bf16.mxu1 %v3338_v53  ;;  %2754 = vmatprep.mubr.msk.bf16.mxu1 %vm3339_vm3, %v3338_v53 }
 0x712   : > { %v2039_v60 = vadd.f32 %v2031_v49, %v2027_v54  ;;  %v2306_v54 = vld [vmem:[%s3984_s15 + $0x10] sm:$0xff] }
 0x713   : > { %v2021_v58 = vpop.permute.xlu1 %2020  ;;  %v2033_v59 = vpop.permute.xlu0 %2032 }
 0x714   : > { %v2028_v61 = vadd.f32 %v2021_v58, %v2016_v55  ;;  %v2042_v2 = vmul.f32 0.25, %v2039_v60  ;;  %v2304_v55 = vld [vmem:[%s3984_s15] sm:$0xff] }
 0x716   : > { %v2040_v63 = vadd.f32 %v2033_v59, %v2028_v61  ;;  %v2307_v59 = vld [vmem:[%s3984_s15 + $0x18] sm:$0xff] }
 0x717   : > { %v2011_v1 = vpop.permute.xlu0 %2010  ;;  %v2023_v57 = vpop.permute.xlu1 %2022 }
 0x718   : > { %v2043_v4 = vmul.f32 0.25, %v2040_v63  ;;  %v2017_v56 = vadd.f32 %v2011_v1, %v1998_v47  ;;  %v2305_v63 = vld [vmem:[%s3984_s15 + $0x8] sm:$0xff] }
 0x71a   : > { %v2055_v5 = vpack.c.bf16 %v2043_v4, %v2042_v2  ;;  %v2029_v6 = vadd.f32 %v2023_v57, %v2017_v56 }
 0x71b   : > { %v2035_v7 = vpop.permute.xlu0 %2034 }
 0x71c   : > { %v2041_v8 = vadd.f32 %v2035_v7, %v2029_v6  ;;  %2718 = vmatprep.subr.bf16.mxu0 %v2055_v5  ;;  %v2308_v6 = vld [vmem:[%s3984_s15 + $0x20] sm:$0xff] }
 0x71d   : > { %2719 = vmatpush3.bf16.msra.mxu0 %v2055_v5  ;;  %v2310_v5 = vld [vmem:[%s3984_s15 + $0x30] sm:$0xff] }
 0x71e   : > { %v2044_v9 = vmul.f32 0.25, %v2041_v8  ;;  %v2311_v8 = vld [vmem:[%s3984_s15 + $0x38] sm:$0xff] }
 0x720   : > { %v2056_v10 = vpack.c.bf16 %v2044_v9, %v2044_v9 }
 0x722   : > { %2779 = vmatprep.subr.msk.bf16.mxu0 %vm790_vm8, %v2056_v10  ;;  %v2201_v62 = vsel %vm790_vm8, %v2056_v10, 0 }
 0x723   : > { %2721 = vmatpush3.bf16.msra.mxu0 %v2201_v62  ;;  %v2309_v62 = vld [vmem:[%s3984_s15 + $0x28] sm:$0xff] }
 0x726   : > { %2723 = vmatmul.mubr.msk.bf16.vlgmr.msra.gmra.mrb[16].mxu0 %vm2187_vm2, %v3273_v0 }
 0x727   : > { %2726 = vmatprep.mubr.msk.bf16.mxu0 %vm2187_vm2, %v3274_v11 }
 0x72e   : > { %2727 = vmatmul.mubr.msk.bf16.gmra.mrb[20].mxu0 %vm2187_vm2, %v3275_v12 }
 0x72f   : > { %2738 = vmatprep.mubr.msk.bf16.mxu0 %vm1458_vm13, %v3276_v13 }
 0x7f9   : > { %v2724_v16 = vpop.f32.mrb[16].mxu0 }
 0x7fa   : > { %v2278_v18 = vadd.f32 %v2724_v16, %v2270_v14  ;;  %v2237_v19 = vpop.f32.mrb[17].mxu0 }
 0x7fb   : > { %v2276_v21 = vadd.f32 %v2268_v15, %v2237_v19  ;;  %v2725_v22 = vpop.f32.mrb[18].mxu0 }
 0x7fc   : > { %3280 = vtanh.f32 %v2278_v18  ;;  %v2279_v23 = vadd.f32 %v2725_v22, %v2271_v17  ;;  %v2240_v24 = vpop.f32.mrb[19].mxu0 }
 0x7fd   : > { %3282 = vtanh.f32 %v2276_v21  ;;  %v2277_v25 = vadd.f32 %v2269_v20, %v2240_v24 }
 0x7fe   : > { %3284 = vtanh.f32 %v2279_v23 }
 0x7ff   : > { %3286 = vtanh.f32 %v2277_v25 }
 0x801   : > { %v2728_v28 = vpop.f32.mrb[20].mxu0 }
 0x802   : > { %v2282_v30 = vadd.f32 %v2728_v28, %v2274_v26  ;;  %v2253_v31 = vpop.f32.mrb[21].mxu0  ;;  %v2466_v28 = vld [vmem:[%s3987_s18] sm:$0x3] }
 0x803   : > { %v2280_v33 = vadd.f32 %v2272_v27, %v2253_v31  ;;  %v2729_v34 = vpop.f32.mrb[22].mxu0  ;;  %v2421_v27 = vld [vmem:[%s3985_s16] sm:$0x3] }
 0x804   : > { %3288 = vtanh.f32 %v2282_v30  ;;  %v2283_v35 = vadd.f32 %v2729_v34, %v2275_v29  ;;  %v2256_v36 = vpop.f32.mrb[23].mxu0  ;;  %v2514_v29 = vlaneseq  ;;  %v2511_v30 = vld [vmem:[%s654_s0] sm:$0x1] }
 0x805   : > { %3290 = vtanh.f32 %v2280_v33  ;;  %v2281_v37 = vadd.f32 %v2273_v32, %v2256_v36  ;;  %vm2512_vm4 = vcmp.eq.s32.totalorder %v2511_v30, 0  ;;  %v2467_v36 = vld [vmem:[%s3988_s19] sm:$0xf] }
 0x806   : > { %v3281_v38 = vpop.eup %3280  ;;  %3292 = vtanh.f32 %v2283_v35  ;;  %v2515_v31 = vshrl.u32 %v2514_v29, 7  ;;  %v2513_v33 = vsel %vm2512_vm4, 1, %v3330_v3  ;;  %v2422_v35 = vld [vmem:[%s3986_s17] sm:$0xf] }
 0x807   : > { %v3283_v39 = vpop.eup %3282  ;;  %3294 = vtanh.f32 %v2281_v37 }
 0x808   : > { %v3285_v40 = vpop.eup %3284  ;;  %v2516_v32 = vsub.s32 0, %v2515_v31 }
 0x809   : > { %v3287_v41 = vpop.eup %3286  ;;  %v2301_v42 = vpack.c.bf16 %v3285_v40, %v3281_v38 }
 0x80a   : > { %v2300_v43 = vpack.c.bf16 %v3287_v41, %v3283_v39  ;;  %v2517_v34 = vrot.slane %v2513_v33, %v2516_v32 }
 0x80c   : > { %2730 = vmatprep.subr.bf16.mxu0 %v2300_v43  ;;  %vm2518_vm5 = vcmp.eq.s32.totalorder %v2517_v34, 1 }
 0x80d   : > { %2731 = vmatpush3.bf16.msra.mxu0 %v2300_v43 }
 0x80e   : > { %v3289_v44 = vpop.eup %3288  ;;  %2732 = vmatprep.subr.bf16.mxu0 %v2301_v42 }
 0x80f   : > { %v3291_v45 = vpop.eup %3290 }
 0x810   : > { %v3293_v46 = vpop.eup %3292 }
 0x811   : > { %v3295_v47 = vpop.eup %3294  ;;  %2733 = vmatpush3.bf16.msra.mxu0 %v2301_v42  ;;  %v2303_v48 = vpack.c.bf16 %v3293_v46, %v3289_v44 }
 0x812   : > { %v2302_v49 = vpack.c.bf16 %v3295_v47, %v3291_v45 }
 0x814   : > { %2734 = vmatprep.subr.bf16.mxu0 %v2302_v49 }
 0x815   : > { %2735 = vmatpush3.bf16.msra.mxu0 %v2302_v49 }
 0x816   : > { %2736 = vmatprep.subr.bf16.mxu0 %v2303_v48 }
 0x819   : > { %2737 = vmatpush3.bf16.msra.mxu0 %v2303_v48 }
 0x81a   : > { %2758 = vmatprep.subr.bf16.mxu0 %v3338_v53 }
 0x81c   : > { %2739 = vmatmul.mubr.msk.bf16.vlgmr.msra.gmra.mrb[24].mxu0 %vm1458_vm13, %v3277_v50 }
 0x81d   : > { %2742 = vmatprep.mubr.msk.bf16.mxu0 %vm1458_vm13, %v3278_v51 }
 0x824   : > { %2743 = vmatmul.mubr.msk.bf16.gmra.mrb[28].mxu0 %vm1458_vm13, %v3279_v52 }
 0x825   : > { %2766 = vmatprep.mubr.msk.bf16.mxu0 %vm3339_vm3, %v3338_v53 }
 0x8ef   : > { %v2740_v58 = vpop.f32.mrb[24].mxu0 }
 0x8f0   : > { %v2387_v60 = vadd.f32 %v2740_v58, %v2306_v54  ;;  %v2378_v61 = vpop.f32.mrb[25].mxu0 }
 0x8f1   : > { %v2379_v1 = vadd.f32 %v2378_v61, %v2304_v55  ;;  %v2741_v2 = vpop.f32.mrb[26].mxu0 }
 0x8f2   : > { %3296 = vtanh.f32 %v2387_v60  ;;  %v2390_v4 = vadd.f32 %v2741_v2, %v2307_v59  ;;  %v2381_v56 = vpop.f32.mrb[27].mxu0 }
 0x8f3   : > { %3298 = vtanh.f32 %v2379_v1  ;;  %v2382_v57 = vadd.f32 %v2381_v56, %v2305_v63 }
 0x8f4   : > { %3300 = vtanh.f32 %v2390_v4 }
 0x8f5   : > { %3302 = vtanh.f32 %v2382_v57 }
 0x8f7   : > { %v2744_v7 = vpop.f32.mrb[28].mxu0 }
 0x8f8   : > { %v2403_v9 = vadd.f32 %v2744_v7, %v2310_v5  ;;  %v2394_v10 = vpop.f32.mrb[29].mxu0 }
 0x8f9   : > { %v2395_v0 = vadd.f32 %v2394_v10, %v2308_v6  ;;  %v2745_v11 = vpop.f32.mrb[30].mxu0 }
 0x8fa   : > { %3304 = vtanh.f32 %v2403_v9  ;;  %v2406_v12 = vadd.f32 %v2745_v11, %v2311_v8  ;;  %v2397_v13 = vpop.f32.mrb[31].mxu0 }
 0x8fb   : > { %3306 = vtanh.f32 %v2395_v0  ;;  %v2398_v14 = vadd.f32 %v2397_v13, %v2309_v62 }
 0x8fc   : > { %v3297_v15 = vpop.eup %3296  ;;  %3308 = vtanh.f32 %v2406_v12 }
 0x8fd   : > { %v3299_v16 = vpop.eup %3298  ;;  %3310 = vtanh.f32 %v2398_v14 }
 0x8fe   : > { %v3301_v17 = vpop.eup %3300 }
 0x8ff   : > { %v3303_v18 = vpop.eup %3302  ;;  %v2418_v19 = vpack.c.bf16 %v3301_v17, %v3297_v15 }
 0x900   : > { %v2417_v20 = vpack.c.bf16 %v3303_v18, %v3299_v16 }
 0x902   : > { %2747 = vmatpush3.bf16.msra.mxu1 %v2417_v20  ;;  %2759 = vmatpush3.bf16.msra.mxu0 %v2417_v20 }
 0x903   : > { %2748 = vmatprep.subr.bf16.mxu1 %v3338_v53  ;;  %2760 = vmatprep.subr.bf16.mxu0 %v3338_v53 }
 0x904   : > { %v3305_v21 = vpop.eup %3304 }
 0x905   : > { %v3307_v22 = vpop.eup %3306 }
 0x906   : > { %v3309_v23 = vpop.eup %3308  ;;  %2749 = vmatpush3.bf16.msra.mxu1 %v2418_v19  ;;  %2761 = vmatpush3.bf16.msra.mxu0 %v2418_v19 }
 0x907   : > { %v3311_v24 = vpop.eup %3310  ;;  %2750 = vmatprep.subr.bf16.mxu1 %v3338_v53  ;;  %2762 = vmatprep.subr.bf16.mxu0 %v3338_v53  ;;  %v2420_v25 = vpack.c.bf16 %v3309_v23, %v3305_v21 }
 0x908   : > { %v2419_v26 = vpack.c.bf16 %v3311_v24, %v3307_v22 }
 0x90a   : > { %2751 = vmatpush3.bf16.msra.mxu1 %v2419_v26  ;;  %2763 = vmatpush3.bf16.msra.mxu0 %v2419_v26 }
 0x90b   : > { %2752 = vmatprep.subr.bf16.mxu1 %v3338_v53  ;;  %2764 = vmatprep.subr.bf16.mxu0 %v3338_v53 }
 0x90e   : > { %2753 = vmatpush3.bf16.msra.mxu1 %v2420_v25  ;;  %2765 = vmatpush3.bf16.msra.mxu0 %v2420_v25 }
 0x911   : > { %2755 = vmatmul.mubr.msk.bf16.vlgmr.msra.gmra.mrb[16].mxu1 %vm1458_vm13, %v2421_v27  ;;  %2767 = vmatmul.mubr.msk.bf16.vlgmr.msra.gmra.mrb[32].mxu0 %vm1458_vm13, %v2466_v28 }
 0x9e4   : > { %v2460_v37 = vpop.f32.mrb[16].mxu1  ;;  %v2505_v38 = vpop.f32.mrb[32].mxu0 }
 0x9e5   : > { %v2461_v39 = vadd.f32 %v2460_v37, %v2422_v35  ;;  %v2506_v40 = vadd.f32 %v2505_v38, %v2467_v36  ;;  %v2756_v41 = vpop.f32.mrb[17].mxu1  ;;  %v2768_v42 = vpop.f32.mrb[33].mxu0 }
 0x9e6   : > { %v2463_v43 = vpop.f32.mrb[18].mxu1  ;;  %v2508_v44 = vpop.f32.mrb[34].mxu0 }
 0x9e7   : > { %v2519_v3 = vsel %vm2518_vm5, %v2461_v39, %v2506_v40  ;;  %v2757_v45 = vpop.f32.mrb[19].mxu1  ;;  %v2769_v46 = vpop.f32.mrb[35].mxu0 }
 0x9e8   : > { %v2521_v47 = vsel %vm2520_vm6, %v2519_v3, -inf }
 0x9e9   : > { %v2522_v48 = vrot.slane %v2521_v47, 4 }
 0x9eb   : > { %v2523_v49 = vmax.f32 %v2521_v47, %v2522_v48 }
 0x9ed   : > { %v2524_v50 = vrot.slane %v2523_v49, 2 }
 0x9ef   : > { %v2525_v51 = vmax.f32 %v2523_v49, %v2524_v50 }
 0x9f1   : > { %v2526_v52 = vrot.slane %v2525_v51, 1 }
 0x9f3   : > { %v2527_v53 = vmax.f32 %v2525_v51, %v2526_v52 }
 0x9f5   : > { %v2528_v54 = vsub.f32 %v2519_v3, %v2527_v53 }
 0x9f7   : > { %v2529_v55 = vmul.f32 1.442695, %v2528_v54 }
 0x9f9   : > { %3312 = vpow2.f32 %v2529_v55 }
 0xa03   : > { %v3313_v58 = vpop.eup %3312 }
 0xa04   : > { %v2531_v59 = vsel %vm2520_vm6, %v3313_v58, 0.0 }
 0xa05   : > { %v2532_v60 = vrot.slane %v2531_v59, 4 }
 0xa07   : > { %v2533_v61 = vadd.f32 %v2532_v60, %v2531_v59 }
 0xa09   : > { %v2534_v63 = vrot.slane %v2533_v61, 2 }
 0xa0b   : > { %v2535_v1 = vadd.f32 %v2534_v63, %v2533_v61 }
 0xa0d   : > { %v2536_v2 = vrot.slane %v2535_v1, 1 }
 0xa0f   : > { %v2537_v4 = vadd.f32 %v2536_v2, %v2535_v1 }
 0xa11   : > { %3314 = vrcp.f32 %v2537_v4 }
 0xa1b   : > { %v3315_v56 = vpop.eup %3314 }
 0xa1c   : > { %v2539_v57 = vmul.f32 %v3315_v56, %v3313_v58 }
 0xa1e   : > { %2540 = vst.msk [vmem:[%s658_s26] sm:$0xf] %vm2520_vm6, %v2539_v57 }
 0xa1f PF: > { %s30_s1 = sadd.s32 1, %s3322_s1  }
 0xa20   : > { %p27_p4 = scmp.ge.s32.totalorder %s30_s1, 4  }
 0xa22   :  { %29 = sbr.rel (!%p27_p4) target bundleno = 6 (0x6), region = 136 }

</bundles_post_ra>
